<compile_context>
chip_gen: v7x
topology: tpu7x:2x2x1
jax: 0.10.0
libtpu: 0.0.40
codegen_flags: <defaults>
</compile_context>

<pallas_src>
import functools

import jax
import jax.numpy as jnp
import numpy as np
from jax.experimental import pallas as pl
from jax.experimental.pallas import tpu as pltpu


def _decomp_kernel(parent_ref, children_ref, att_ref, mask_ref, w_ref,
                   scale_ref, bias_ref, out_ref, col_ref, *, W):
  """Grid = (N,): one batch element per step, all K children fused.

  parent_ref   : (1, C, HW)       parent features, channel-major
  children_ref : (1, K*C, HW)     all K children stacked along channels
  att_ref      : (1, K*9, HW)     pre-rolled + pre-masked attention rows,
                                  row index = k*9 + tap
  mask_ref     : (9, HW)          {0,1} boundary masks for the 9 conv taps
  w_ref        : (C, 9*2C)        fused im2col conv weight (tap-major, then cin)
  scale_ref    : (C, 1)           folded BN scale
  bias_ref     : (C, 1)           folded BN bias
  out_ref      : (1, K*C, HW)     output, channel-major
  col_ref      : (9*2C, K*HW)     VMEM K-fused im2col slab scratch
  """
  _, C, HW = parent_ref.shape
  K = children_ref.shape[1] // C
  cdt = col_ref.dtype

  parent = parent_ref[0]                    # (C, HW)   f32
  children = children_ref[0]                # (K*C, HW) f32
  w = w_ref[...]                            # (C, 9*2C)
  scale = scale_ref[...]                    # (C, 1)
  bias = bias_ref[...]                      # (C, 1)

  # Flat spatial shift per tap (dy, dx); out[p] = x[p + s].
  shifts = [(dy - 1) * W + (dx - 1) for dy in range(3) for dx in range(3)]

  # Hoisted parent rolls: one XLU roll per non-center tap, reused across K.
  p_taps = []
  for s in shifts:
    if s == 0:
      p_taps.append(parent)
    else:
      p_taps.append(pltpu.roll(parent, shift=(-s) % HW, axis=1))

  # Build the K-fused im2col slab.  Rows: tap-major [parent-half; child-half],
  # lanes: child-major HW blocks (256-lane aligned -> unmasked stores).
  for t, s in enumerate(shifts):
    base = t * 2 * C
    # Child half: one roll + one mask multiply for the whole (K*C, HW) stack.
    ch_t = children if s == 0 else pltpu.roll(children, shift=(-s) % HW, axis=1)
    if s != 0:
      ch_t = ch_t * mask_ref[t:t + 1, :]    # center tap mask is all-ones
    ch_t = ch_t.astype(cdt)
    for k in range(K):
      # Parent half: hoisted roll * (pre-rolled, pre-masked) attention row.
      a = att_ref[0, k * 9 + t:k * 9 + t + 1, :]                 # (1, HW)
      col_ref[base:base + C, k * HW:(k + 1) * HW] = (p_taps[t] * a).astype(cdt)
      col_ref[base + C:base + 2 * C, k * HW:(k + 1) * HW] = ch_t[k * C:(k + 1) * C, :]

  # ONE deep-contraction MXU matmul for all K children:
  #   (C, 9*2C) @ (9*2C, K*HW) -> (C, K*HW), f32 accumulation.
  acc = jnp.dot(w, col_ref[...], preferred_element_type=jnp.float32)
  y = jnp.maximum(acc * scale + bias, 0.0)                       # folded BN + ReLU
  for k in range(K):                                             # lane-aligned slices
    out_ref[0, k * C:(k + 1) * C, :] = y[:, k * HW:(k + 1) * HW].astype(out_ref.dtype)


def decomposition_forward(parent_nchw, child_list_nchw, decomp_map_nchw,
                          conv_w, bn_gamma, bn_beta, bn_mean, bn_var,
                          eps=1e-5, use_bf16_matmul=True):
  """Wrapper: NCHW in / list-of-NCHW out, matching the PyTorch module."""
  N, C, H, W = parent_nchw.shape
  K = len(child_list_nchw)
  Km = decomp_map_nchw.shape[1]
  assert Km >= K + 1
  HW = H * W

  compute_dtype = jnp.bfloat16 if use_bf16_matmul else jnp.float32

  # Channel-major / lane-dense layouts: only flatten spatial dims, no transposes.
  parent = parent_nchw.reshape(N, C, HW).astype(jnp.float32)
  children = jnp.stack(child_list_nchw, axis=1).reshape(N, K * C, HW)
  children = children.astype(jnp.float32)

  # Precomputed {0,1} boundary masks + flat shifts for the 9 taps.
  rows = np.arange(HW) // W
  cols = np.arange(HW) % W
  mask_np = np.zeros((9, HW), np.float32)
  shifts = []
  ti = 0
  for dy in range(3):
    for dx in range(3):
      valid = ((rows + dy - 1 >= 0) & (rows + dy - 1 < H) &
               (cols + dx - 1 >= 0) & (cols + dx - 1 < W))
      mask_np[ti] = valid.astype(np.float32)
      shifts.append((dy - 1) * W + (dx - 1))
      ti += 1
  masks = jnp.asarray(mask_np)

  # Softmax hoisted to plain XLA (tiny tensor); keep child channels 1..K, and
  # pre-roll + pre-mask each attention row for all 9 taps so the kernel's
  # parent half needs no extra roll or mask.
  att = jax.nn.softmax(decomp_map_nchw.astype(jnp.float32), axis=1)
  att = att[:, 1:K + 1].reshape(N, K, HW)
  att_taps = []
  for t, s in enumerate(shifts):
    a = att if s == 0 else jnp.roll(att, shift=(-s) % HW, axis=-1)
    att_taps.append(a * mask_np[t][None, None, :])
  att_rm = jnp.stack(att_taps, axis=2).reshape(N, K * 9, HW)     # (N, K*9, HW)

  # Conv weight (Cout, 2C, 3, 3) -> fused im2col weight (Cout, 9*2C),
  # tap-major (dy, dx) then input channel, matching the slab layout.
  w_fused = jnp.transpose(conv_w, (0, 2, 3, 1)).reshape(C, 9 * 2 * C)
  w_fused = w_fused.astype(compute_dtype)

  # Fold BN (inference) into per-channel scale / bias, shaped (C, 1) so the
  # broadcast in the kernel is along lanes.
  inv_std = 1.0 / jnp.sqrt(bn_var.astype(jnp.float32) + eps)
  scale = (bn_gamma * inv_std).reshape(C, 1).astype(jnp.float32)
  bias = (bn_beta - bn_mean * bn_gamma * inv_std).reshape(C, 1).astype(jnp.float32)

  kernel = functools.partial(_decomp_kernel, W=W)

  # Advisory cost for XLA's scheduler around this tiny custom call.
  flops = 2 * C * (9 * 2 * C) * (K * HW) * N
  w_bytes = 2 if use_bf16_matmul else 4
  bytes_accessed = int(
      4 * (parent.size + children.size + att_rm.size + masks.size
           + scale.size + bias.size + N * K * C * HW)
      + w_bytes * w_fused.size)

  out = pl.pallas_call(
      kernel,
      out_shape=jax.ShapeDtypeStruct((N, K * C, HW), jnp.float32),
      grid=(N,),
      in_specs=[
          pl.BlockSpec((1, C, HW), lambda n: (n, 0, 0)),         # parent
          pl.BlockSpec((1, K * C, HW), lambda n: (n, 0, 0)),     # all K children
          pl.BlockSpec((1, K * 9, HW), lambda n: (n, 0, 0)),     # rolled+masked att
          pl.BlockSpec((9, HW), lambda n: (0, 0)),               # boundary masks
          pl.BlockSpec((C, 9 * 2 * C), lambda n: (0, 0)),        # fused conv weight
          pl.BlockSpec((C, 1), lambda n: (0, 0)),                # BN scale
          pl.BlockSpec((C, 1), lambda n: (0, 0)),                # BN bias
      ],
      out_specs=pl.BlockSpec((1, K * C, HW), lambda n: (n, 0, 0)),
      scratch_shapes=[
          pltpu.VMEM((9 * 2 * C, K * HW), compute_dtype),        # K-fused im2col slab
      ],
      compiler_params=pltpu.CompilerParams(
          dimension_semantics=("parallel",)),                    # shard N over TCs (v7x)
      cost_estimate=pl.CostEstimate(
          flops=flops, transcendentals=0, bytes_accessed=bytes_accessed),
  )(parent, children, att_rm, masks, w_fused, scale, bias)

  out = out.reshape(N, K, C, H, W)
  return [out[:, i] for i in range(K)]


def decomposition_reference(parent, child_list, dmap, conv_w,
                            gamma, beta, mean, var, eps=1e-5):
  """Pure-JAX NCHW reference mirroring the PyTorch forward."""
  att = jax.nn.softmax(dmap, axis=1)
  s = gamma / jnp.sqrt(var + eps)
  b = beta - mean * s
  outs = []
  for i, ch in enumerate(child_list):
    x = jnp.concatenate([parent * att[:, i + 1:i + 2], ch], axis=1)
    y = jax.lax.conv_general_dilated(
        x, conv_w, window_strides=(1, 1), padding="SAME",
        dimension_numbers=("NCHW", "OIHW", "NCHW"))
    y = y * s[None, :, None, None] + b[None, :, None, None]
    outs.append(jnp.maximum(y, 0.0))
  return outs


if __name__ == "__main__":
  hidden_dim = 8
  N, H, W = 2, 16, 16
  K = 3                      # number of children; decomp_map has K+1 channels

  key = jax.random.PRNGKey(0)
  keys = jax.random.split(key, 10)

  parent = jax.random.normal(keys[0], (N, hidden_dim, H, W), jnp.float32)
  child_list = [
      jax.random.normal(keys[1 + i], (N, hidden_dim, H, W), jnp.float32)
      for i in range(K)
  ]
  decomp_map = jax.random.normal(keys[5], (N, K + 1, H, W), jnp.float32)

  # deterministic parameter init (synthetic, no checkpoint)
  conv_w = 0.1 * jax.random.normal(
      keys[6], (hidden_dim, 2 * hidden_dim, 3, 3), jnp.float32)
  bn_gamma = 1.0 + 0.1 * jax.random.normal(keys[7], (hidden_dim,), jnp.float32)
  bn_beta = 0.1 * jax.random.normal(keys[8], (hidden_dim,), jnp.float32)
  bn_mean = 0.05 * jax.random.normal(keys[9], (hidden_dim,), jnp.float32)
  bn_var = 0.5 + 0.1 * jnp.abs(jax.random.normal(keys[9], (hidden_dim,)))

  refs = decomposition_reference(parent, child_list, decomp_map, conv_w,
                                 bn_gamma, bn_beta, bn_mean, bn_var)

  # Validate both paths: f32 (bit-accuracy headroom) and bf16 (default, MXU-native).
  for use_bf16, tol in [(False, 1e-3), (True, 2e-2)]:
    fwd = jax.jit(functools.partial(decomposition_forward,
                                    use_bf16_matmul=use_bf16))
    outs = fwd(parent, child_list, decomp_map, conv_w,
               bn_gamma, bn_beta, bn_mean, bn_var)
    outs = [jax.block_until_ready(o) for o in outs]
    for o, r in zip(outs, refs):
      np.testing.assert_allclose(np.asarray(o), np.asarray(r),
                                 rtol=tol, atol=tol)

  print("KERNEL_OK")
</pallas_src>

<mosaic_0001>
module attributes {stable_mosaic.version = 11 : i64} {
  func.func @_decomp_kernel(%arg0: i32, %arg1: memref<1x8x256xf32, #tpu.memory_space<vmem>>, %arg2: memref<1x24x256xf32, #tpu.memory_space<vmem>>, %arg3: memref<1x27x256xf32, #tpu.memory_space<vmem>>, %arg4: memref<9x256xf32, #tpu.memory_space<vmem>>, %arg5: memref<8x144xf32, #tpu.memory_space<vmem>>, %arg6: memref<8x1xf32, #tpu.memory_space<vmem>>, %arg7: memref<8x1xf32, #tpu.memory_space<vmem>>, %arg8: memref<1x24x256xf32, #tpu.memory_space<vmem>>, %arg9: memref<144x768xf32, #tpu.memory_space<vmem>>) attributes {dimension_semantics = [#tpu.dimension_semantics<parallel>], iteration_bounds = array<i64: 2>, scalar_prefetch = 0 : i64, scratch_operands = 1 : i64, tpu.core_type = #tpu.core_type<tc>, window_params = [{transform_indices = @transform_0, window_bounds = array<i64: 1, 8, 256>}, {transform_indices = @transform_1, window_bounds = array<i64: 1, 24, 256>}, {transform_indices = @transform_2, window_bounds = array<i64: 1, 27, 256>}, {pipeline_mode = #tpu.pipeline_mode<synchronous>, transform_indices = @transform_3, window_bounds = array<i64: 9, 256>}, {pipeline_mode = #tpu.pipeline_mode<synchronous>, transform_indices = @transform_4, window_bounds = array<i64: 8, 144>}, {pipeline_mode = #tpu.pipeline_mode<synchronous>, transform_indices = @transform_5, window_bounds = array<i64: 8, 1>}, {pipeline_mode = #tpu.pipeline_mode<synchronous>, transform_indices = @transform_6, window_bounds = array<i64: 8, 1>}, {transform_indices = @transform_7, window_bounds = array<i64: 1, 24, 256>}]} {
    %c0 = arith.constant 0 : index
    %c0_0 = arith.constant 0 : index
    %c0_1 = arith.constant 0 : index
    %0 = vector.load %arg1[%c0, %c0_0, %c0_1] : memref<1x8x256xf32, #tpu.memory_space<vmem>>, vector<1x8x256xf32>
    %1 = vector.shape_cast %0 : vector<1x8x256xf32> to vector<8x256xf32>
    %c0_2 = arith.constant 0 : index
    %c0_3 = arith.constant 0 : index
    %c0_4 = arith.constant 0 : index
    %2 = vector.load %arg2[%c0_2, %c0_3, %c0_4] : memref<1x24x256xf32, #tpu.memory_space<vmem>>, vector<1x24x256xf32>
    %3 = vector.shape_cast %2 : vector<1x24x256xf32> to vector<24x256xf32>
    %c0_5 = arith.constant 0 : index
    %c0_6 = arith.constant 0 : index
    %4 = vector.load %arg5[%c0_5, %c0_6] : memref<8x144xf32, #tpu.memory_space<vmem>>, vector<8x144xf32>
    %c0_7 = arith.constant 0 : index
    %c0_8 = arith.constant 0 : index
    %5 = vector.load %arg6[%c0_7, %c0_8] : memref<8x1xf32, #tpu.memory_space<vmem>>, vector<8x1xf32>
    %c0_9 = arith.constant 0 : index
    %c0_10 = arith.constant 0 : index
    %6 = vector.load %arg7[%c0_9, %c0_10] : memref<8x1xf32, #tpu.memory_space<vmem>>, vector<8x1xf32>
    %c17_i32 = arith.constant 17 : i32
    %7 = tpu.dynamic_rotate %1 by %c17_i32 dim 1 : vector<8x256xf32>, i32 -> vector<8x256xf32>
    %c16_i32 = arith.constant 16 : i32
    %8 = tpu.dynamic_rotate %1 by %c16_i32 dim 1 : vector<8x256xf32>, i32 -> vector<8x256xf32>
    %c15_i32 = arith.constant 15 : i32
    %9 = tpu.dynamic_rotate %1 by %c15_i32 dim 1 : vector<8x256xf32>, i32 -> vector<8x256xf32>
    %c1_i32 = arith.constant 1 : i32
    %10 = tpu.dynamic_rotate %1 by %c1_i32 dim 1 : vector<8x256xf32>, i32 -> vector<8x256xf32>
    %c255_i32 = arith.constant 255 : i32
    %11 = tpu.dynamic_rotate %1 by %c255_i32 dim 1 : vector<8x256xf32>, i32 -> vector<8x256xf32>
    %c241_i32 = arith.constant 241 : i32
    %12 = tpu.dynamic_rotate %1 by %c241_i32 dim 1 : vector<8x256xf32>, i32 -> vector<8x256xf32>
    %c240_i32 = arith.constant 240 : i32
    %13 = tpu.dynamic_rotate %1 by %c240_i32 dim 1 : vector<8x256xf32>, i32 -> vector<8x256xf32>
    %c239_i32 = arith.constant 239 : i32
    %14 = tpu.dynamic_rotate %1 by %c239_i32 dim 1 : vector<8x256xf32>, i32 -> vector<8x256xf32>
    %c17_i32_11 = arith.constant 17 : i32
    %15 = tpu.dynamic_rotate %3 by %c17_i32_11 dim 1 : vector<24x256xf32>, i32 -> vector<24x256xf32>
    %c0_12 = arith.constant 0 : index
    %c0_13 = arith.constant 0 : index
    %16 = vector.load %arg4[%c0_12, %c0_13] : memref<9x256xf32, #tpu.memory_space<vmem>>, vector<1x256xf32>
    %17 = vector.broadcast %16 : vector<1x256xf32> to vector<24x256xf32>
    %18 = arith.mulf %15, %17 : vector<24x256xf32>
    %c0_14 = arith.constant 0 : index
    %c0_15 = arith.constant 0 : index
    %c0_16 = arith.constant 0 : index
    %19 = vector.load %arg3[%c0_14, %c0_15, %c0_16] : memref<1x27x256xf32, #tpu.memory_space<vmem>>, vector<1x1x256xf32>
    %20 = vector.shape_cast %19 : vector<1x1x256xf32> to vector<1x256xf32>
    %21 = vector.broadcast %20 : vector<1x256xf32> to vector<8x256xf32>
    %22 = arith.mulf %7, %21 : vector<8x256xf32>
    %c0_17 = arith.constant 0 : index
    %c0_18 = arith.constant 0 : index
    %23 = vector.load %arg9[%c0_17, %c0_18] : memref<144x768xf32, #tpu.memory_space<vmem>>, vector<8x256xf32>
    tpu.vector_store %arg9[%c0_17, %c0_18], %22 {strides = array<i32>} : memref<144x768xf32, #tpu.memory_space<vmem>>, vector<8x256xf32>,
    %24 = vector.extract_strided_slice %18 {offsets = [0, 0], sizes = [8, 256], strides = [1, 1]} : vector<24x256xf32> to vector<8x256xf32>
    %c8 = arith.constant 8 : index
    %c0_19 = arith.constant 0 : index
    %25 = vector.load %arg9[%c8, %c0_19] : memref<144x768xf32, #tpu.memory_space<vmem>>, vector<8x256xf32>
    tpu.vector_store %arg9[%c8, %c0_19], %24 {strides = array<i32>} : memref<144x768xf32, #tpu.memory_space<vmem>>, vector<8x256xf32>,
    %c0_20 = arith.constant 0 : index
    %c9 = arith.constant 9 : index
    %c0_21 = arith.constant 0 : index
    %26 = vector.load %arg3[%c0_20, %c9, %c0_21] : memref<1x27x256xf32, #tpu.memory_space<vmem>>, vector<1x1x256xf32>
    %27 = vector.shape_cast %26 : vector<1x1x256xf32> to vector<1x256xf32>
    %28 = vector.broadcast %27 : vector<1x256xf32> to vector<8x256xf32>
    %29 = arith.mulf %7, %28 : vector<8x256xf32>
    %c0_22 = arith.constant 0 : index
    %c256 = arith.constant 256 : index
    %30 = vector.load %arg9[%c0_22, %c256] : memref<144x768xf32, #tpu.memory_space<vmem>>, vector<8x256xf32>
    tpu.vector_store %arg9[%c0_22, %c256], %29 {strides = array<i32>} : memref<144x768xf32, #tpu.memory_space<vmem>>, vector<8x256xf32>,
    %31 = vector.extract_strided_slice %18 {offsets = [8, 0], sizes = [8, 256], strides = [1, 1]} : vector<24x256xf32> to vector<8x256xf32>
    %c8_23 = arith.constant 8 : index
    %c256_24 = arith.constant 256 : index
    %32 = vector.load %arg9[%c8_23, %c256_24] : memref<144x768xf32, #tpu.memory_space<vmem>>, vector<8x256xf32>
    tpu.vector_store %arg9[%c8_23, %c256_24], %31 {strides = array<i32>} : memref<144x768xf32, #tpu.memory_space<vmem>>, vector<8x256xf32>,
    %c0_25 = arith.constant 0 : index
    %c18 = arith.constant 18 : index
    %c0_26 = arith.constant 0 : index
    %33 = vector.load %arg3[%c0_25, %c18, %c0_26] : memref<1x27x256xf32, #tpu.memory_space<vmem>>, vector<1x1x256xf32>
    %34 = vector.shape_cast %33 : vector<1x1x256xf32> to vector<1x256xf32>
    %35 = vector.broadcast %34 : vector<1x256xf32> to vector<8x256xf32>
    %36 = arith.mulf %7, %35 : vector<8x256xf32>
    %c0_27 = arith.constant 0 : index
    %c512 = arith.constant 512 : index
    %37 = vector.load %arg9[%c0_27, %c512] : memref<144x768xf32, #tpu.memory_space<vmem>>, vector<8x256xf32>
    tpu.vector_store %arg9[%c0_27, %c512], %36 {strides = array<i32>} : memref<144x768xf32, #tpu.memory_space<vmem>>, vector<8x256xf32>,
    %38 = vector.extract_strided_slice %18 {offsets = [16, 0], sizes = [8, 256], strides = [1, 1]} : vector<24x256xf32> to vector<8x256xf32>
    %c8_28 = arith.constant 8 : index
    %c512_29 = arith.constant 512 : index
    %39 = vector.load %arg9[%c8_28, %c512_29] : memref<144x768xf32, #tpu.memory_space<vmem>>, vector<8x256xf32>
    tpu.vector_store %arg9[%c8_28, %c512_29], %38 {strides = array<i32>} : memref<144x768xf32, #tpu.memory_space<vmem>>, vector<8x256xf32>,
    %c16_i32_30 = arith.constant 16 : i32
    %40 = tpu.dynamic_rotate %3 by %c16_i32_30 dim 1 : vector<24x256xf32>, i32 -> vector<24x256xf32>
    %c1 = arith.constant 1 : index
    %c0_31 = arith.constant 0 : index
    %41 = vector.load %arg4[%c1, %c0_31] : memref<9x256xf32, #tpu.memory_space<vmem>>, vector<1x256xf32>
    %42 = vector.broadcast %41 : vector<1x256xf32> to vector<24x256xf32>
    %43 = arith.mulf %40, %42 : vector<24x256xf32>
    %c0_32 = arith.constant 0 : index
    %c1_33 = arith.constant 1 : index
    %c0_34 = arith.constant 0 : index
    %44 = vector.load %arg3[%c0_32, %c1_33, %c0_34] : memref<1x27x256xf32, #tpu.memory_space<vmem>>, vector<1x1x256xf32>
    %45 = vector.shape_cast %44 : vector<1x1x256xf32> to vector<1x256xf32>
    %46 = vector.broadcast %45 : vector<1x256xf32> to vector<8x256xf32>
    %47 = arith.mulf %8, %46 : vector<8x256xf32>
    %c16 = arith.constant 16 : index
    %c0_35 = arith.constant 0 : index
    %48 = vector.load %arg9[%c16, %c0_35] : memref<144x768xf32, #tpu.memory_space<vmem>>, vector<8x256xf32>
    tpu.vector_store %arg9[%c16, %c0_35], %47 {strides = array<i32>} : memref<144x768xf32, #tpu.memory_space<vmem>>, vector<8x256xf32>,
    %49 = vector.extract_strided_slice %43 {offsets = [0, 0], sizes = [8, 256], strides = [1, 1]} : vector<24x256xf32> to vector<8x256xf32>
    %c24 = arith.constant 24 : index
    %c0_36 = arith.constant 0 : index
    %50 = vector.load %arg9[%c24, %c0_36] : memref<144x768xf32, #tpu.memory_space<vmem>>, vector<8x256xf32>
    tpu.vector_store %arg9[%c24, %c0_36], %49 {strides = array<i32>} : memref<144x768xf32, #tpu.memory_space<vmem>>, vector<8x256xf32>,
    %c0_37 = arith.constant 0 : index
    %c10 = arith.constant 10 : index
    %c0_38 = arith.constant 0 : index
    %51 = vector.load %arg3[%c0_37, %c10, %c0_38] : memref<1x27x256xf32, #tpu.memory_space<vmem>>, vector<1x1x256xf32>
    %52 = vector.shape_cast %51 : vector<1x1x256xf32> to vector<1x256xf32>
    %53 = vector.broadcast %52 : vector<1x256xf32> to vector<8x256xf32>
    %54 = arith.mulf %8, %53 : vector<8x256xf32>
    %c16_39 = arith.constant 16 : index
    %c256_40 = arith.constant 256 : index
    %55 = vector.load %arg9[%c16_39, %c256_40] : memref<144x768xf32, #tpu.memory_space<vmem>>, vector<8x256xf32>
    tpu.vector_store %arg9[%c16_39, %c256_40], %54 {strides = array<i32>} : memref<144x768xf32, #tpu.memory_space<vmem>>, vector<8x256xf32>,
    %56 = vector.extract_strided_slice %43 {offsets = [8, 0], sizes = [8, 256], strides = [1, 1]} : vector<24x256xf32> to vector<8x256xf32>
    %c24_41 = arith.constant 24 : index
    %c256_42 = arith.constant 256 : index
    %57 = vector.load %arg9[%c24_41, %c256_42] : memref<144x768xf32, #tpu.memory_space<vmem>>, vector<8x256xf32>
    tpu.vector_store %arg9[%c24_41, %c256_42], %56 {strides = array<i32>} : memref<144x768xf32, #tpu.memory_space<vmem>>, vector<8x256xf32>,
    %c0_43 = arith.constant 0 : index
    %c19 = arith.constant 19 : index
    %c0_44 = arith.constant 0 : index
    %58 = vector.load %arg3[%c0_43, %c19, %c0_44] : memref<1x27x256xf32, #tpu.memory_space<vmem>>, vector<1x1x256xf32>
    %59 = vector.shape_cast %58 : vector<1x1x256xf32> to vector<1x256xf32>
    %60 = vector.broadcast %59 : vector<1x256xf32> to vector<8x256xf32>
    %61 = arith.mulf %8, %60 : vector<8x256xf32>
    %c16_45 = arith.constant 16 : index
    %c512_46 = arith.constant 512 : index
    %62 = vector.load %arg9[%c16_45, %c512_46] : memref<144x768xf32, #tpu.memory_space<vmem>>, vector<8x256xf32>
    tpu.vector_store %arg9[%c16_45, %c512_46], %61 {strides = array<i32>} : memref<144x768xf32, #tpu.memory_space<vmem>>, vector<8x256xf32>,
    %63 = vector.extract_strided_slice %43 {offsets = [16, 0], sizes = [8, 256], strides = [1, 1]} : vector<24x256xf32> to vector<8x256xf32>
    %c24_47 = arith.constant 24 : index
    %c512_48 = arith.constant 512 : index
    %64 = vector.load %arg9[%c24_47, %c512_48] : memref<144x768xf32, #tpu.memory_space<vmem>>, vector<8x256xf32>
    tpu.vector_store %arg9[%c24_47, %c512_48], %63 {strides = array<i32>} : memref<144x768xf32, #tpu.memory_space<vmem>>, vector<8x256xf32>,
    %c15_i32_49 = arith.constant 15 : i32
    %65 = tpu.dynamic_rotate %3 by %c15_i32_49 dim 1 : vector<24x256xf32>, i32 -> vector<24x256xf32>
    %c2 = arith.constant 2 : index
    %c0_50 = arith.constant 0 : index
    %66 = vector.load %arg4[%c2, %c0_50] : memref<9x256xf32, #tpu.memory_space<vmem>>, vector<1x256xf32>
    %67 = vector.broadcast %66 : vector<1x256xf32> to vector<24x256xf32>
    %68 = arith.mulf %65, %67 : vector<24x256xf32>
    %c0_51 = arith.constant 0 : index
    %c2_52 = arith.constant 2 : index
    %c0_53 = arith.constant 0 : index
    %69 = vector.load %arg3[%c0_51, %c2_52, %c0_53] : memref<1x27x256xf32, #tpu.memory_space<vmem>>, vector<1x1x256xf32>
    %70 = vector.shape_cast %69 : vector<1x1x256xf32> to vector<1x256xf32>
    %71 = vector.broadcast %70 : vector<1x256xf32> to vector<8x256xf32>
    %72 = arith.mulf %9, %71 : vector<8x256xf32>
    %c32 = arith.constant 32 : index
    %c0_54 = arith.constant 0 : index
    %73 = vector.load %arg9[%c32, %c0_54] : memref<144x768xf32, #tpu.memory_space<vmem>>, vector<8x256xf32>
    tpu.vector_store %arg9[%c32, %c0_54], %72 {strides = array<i32>} : memref<144x768xf32, #tpu.memory_space<vmem>>, vector<8x256xf32>,
    %74 = vector.extract_strided_slice %68 {offsets = [0, 0], sizes = [8, 256], strides = [1, 1]} : vector<24x256xf32> to vector<8x256xf32>
    %c40 = arith.constant 40 : index
    %c0_55 = arith.constant 0 : index
    %75 = vector.load %arg9[%c40, %c0_55] : memref<144x768xf32, #tpu.memory_space<vmem>>, vector<8x256xf32>
    tpu.vector_store %arg9[%c40, %c0_55], %74 {strides = array<i32>} : memref<144x768xf32, #tpu.memory_space<vmem>>, vector<8x256xf32>,
    %c0_56 = arith.constant 0 : index
    %c11 = arith.constant 11 : index
    %c0_57 = arith.constant 0 : index
    %76 = vector.load %arg3[%c0_56, %c11, %c0_57] : memref<1x27x256xf32, #tpu.memory_space<vmem>>, vector<1x1x256xf32>
    %77 = vector.shape_cast %76 : vector<1x1x256xf32> to vector<1x256xf32>
    %78 = vector.broadcast %77 : vector<1x256xf32> to vector<8x256xf32>
    %79 = arith.mulf %9, %78 : vector<8x256xf32>
    %c32_58 = arith.constant 32 : index
    %c256_59 = arith.constant 256 : index
    %80 = vector.load %arg9[%c32_58, %c256_59] : memref<144x768xf32, #tpu.memory_space<vmem>>, vector<8x256xf32>
    tpu.vector_store %arg9[%c32_58, %c256_59], %79 {strides = array<i32>} : memref<144x768xf32, #tpu.memory_space<vmem>>, vector<8x256xf32>,
    %81 = vector.extract_strided_slice %68 {offsets = [8, 0], sizes = [8, 256], strides = [1, 1]} : vector<24x256xf32> to vector<8x256xf32>
    %c40_60 = arith.constant 40 : index
    %c256_61 = arith.constant 256 : index
    %82 = vector.load %arg9[%c40_60, %c256_61] : memref<144x768xf32, #tpu.memory_space<vmem>>, vector<8x256xf32>
    tpu.vector_store %arg9[%c40_60, %c256_61], %81 {strides = array<i32>} : memref<144x768xf32, #tpu.memory_space<vmem>>, vector<8x256xf32>,
    %c0_62 = arith.constant 0 : index
    %c20 = arith.constant 20 : index
    %c0_63 = arith.constant 0 : index
    %83 = vector.load %arg3[%c0_62, %c20, %c0_63] : memref<1x27x256xf32, #tpu.memory_space<vmem>>, vector<1x1x256xf32>
    %84 = vector.shape_cast %83 : vector<1x1x256xf32> to vector<1x256xf32>
    %85 = vector.broadcast %84 : vector<1x256xf32> to vector<8x256xf32>
    %86 = arith.mulf %9, %85 : vector<8x256xf32>
    %c32_64 = arith.constant 32 : index
    %c512_65 = arith.constant 512 : index
    %87 = vector.load %arg9[%c32_64, %c512_65] : memref<144x768xf32, #tpu.memory_space<vmem>>, vector<8x256xf32>
    tpu.vector_store %arg9[%c32_64, %c512_65], %86 {strides = array<i32>} : memref<144x768xf32, #tpu.memory_space<vmem>>, vector<8x256xf32>,
    %88 = vector.extract_strided_slice %68 {offsets = [16, 0], sizes = [8, 256], strides = [1, 1]} : vector<24x256xf32> to vector<8x256xf32>
    %c40_66 = arith.constant 40 : index
    %c512_67 = arith.constant 512 : index
    %89 = vector.load %arg9[%c40_66, %c512_67] : memref<144x768xf32, #tpu.memory_space<vmem>>, vector<8x256xf32>
    tpu.vector_store %arg9[%c40_66, %c512_67], %88 {strides = array<i32>} : memref<144x768xf32, #tpu.memory_space<vmem>>, vector<8x256xf32>,
    %c1_i32_68 = arith.constant 1 : i32
    %90 = tpu.dynamic_rotate %3 by %c1_i32_68 dim 1 : vector<24x256xf32>, i32 -> vector<24x256xf32>
    %c3 = arith.constant 3 : index
    %c0_69 = arith.constant 0 : index
    %91 = vector.load %arg4[%c3, %c0_69] : memref<9x256xf32, #tpu.memory_space<vmem>>, vector<1x256xf32>
    %92 = vector.broadcast %91 : vector<1x256xf32> to vector<24x256xf32>
    %93 = arith.mulf %90, %92 : vector<24x256xf32>
    %c0_70 = arith.constant 0 : index
    %c3_71 = arith.constant 3 : index
    %c0_72 = arith.constant 0 : index
    %94 = vector.load %arg3[%c0_70, %c3_71, %c0_72] : memref<1x27x256xf32, #tpu.memory_space<vmem>>, vector<1x1x256xf32>
    %95 = vector.shape_cast %94 : vector<1x1x256xf32> to vector<1x256xf32>
    %96 = vector.broadcast %95 : vector<1x256xf32> to vector<8x256xf32>
    %97 = arith.mulf %10, %96 : vector<8x256xf32>
    %c48 = arith.constant 48 : index
    %c0_73 = arith.constant 0 : index
    %98 = vector.load %arg9[%c48, %c0_73] : memref<144x768xf32, #tpu.memory_space<vmem>>, vector<8x256xf32>
    tpu.vector_store %arg9[%c48, %c0_73], %97 {strides = array<i32>} : memref<144x768xf32, #tpu.memory_space<vmem>>, vector<8x256xf32>,
    %99 = vector.extract_strided_slice %93 {offsets = [0, 0], sizes = [8, 256], strides = [1, 1]} : vector<24x256xf32> to vector<8x256xf32>
    %c56 = arith.constant 56 : index
    %c0_74 = arith.constant 0 : index
    %100 = vector.load %arg9[%c56, %c0_74] : memref<144x768xf32, #tpu.memory_space<vmem>>, vector<8x256xf32>
    tpu.vector_store %arg9[%c56, %c0_74], %99 {strides = array<i32>} : memref<144x768xf32, #tpu.memory_space<vmem>>, vector<8x256xf32>,
    %c0_75 = arith.constant 0 : index
    %c12 = arith.constant 12 : index
    %c0_76 = arith.constant 0 : index
    %101 = vector.load %arg3[%c0_75, %c12, %c0_76] : memref<1x27x256xf32, #tpu.memory_space<vmem>>, vector<1x1x256xf32>
    %102 = vector.shape_cast %101 : vector<1x1x256xf32> to vector<1x256xf32>
    %103 = vector.broadcast %102 : vector<1x256xf32> to vector<8x256xf32>
    %104 = arith.mulf %10, %103 : vector<8x256xf32>
    %c48_77 = arith.constant 48 : index
    %c256_78 = arith.constant 256 : index
    %105 = vector.load %arg9[%c48_77, %c256_78] : memref<144x768xf32, #tpu.memory_space<vmem>>, vector<8x256xf32>
    tpu.vector_store %arg9[%c48_77, %c256_78], %104 {strides = array<i32>} : memref<144x768xf32, #tpu.memory_space<vmem>>, vector<8x256xf32>,
    %106 = vector.extract_strided_slice %93 {offsets = [8, 0], sizes = [8, 256], strides = [1, 1]} : vector<24x256xf32> to vector<8x256xf32>
    %c56_79 = arith.constant 56 : index
    %c256_80 = arith.constant 256 : index
    %107 = vector.load %arg9[%c56_79, %c256_80] : memref<144x768xf32, #tpu.memory_space<vmem>>, vector<8x256xf32>
    tpu.vector_store %arg9[%c56_79, %c256_80], %106 {strides = array<i32>} : memref<144x768xf32, #tpu.memory_space<vmem>>, vector<8x256xf32>,
    %c0_81 = arith.constant 0 : index
    %c21 = arith.constant 21 : index
    %c0_82 = arith.constant 0 : index
    %108 = vector.load %arg3[%c0_81, %c21, %c0_82] : memref<1x27x256xf32, #tpu.memory_space<vmem>>, vector<1x1x256xf32>
    %109 = vector.shape_cast %108 : vector<1x1x256xf32> to vector<1x256xf32>
    %110 = vector.broadcast %109 : vector<1x256xf32> to vector<8x256xf32>
    %111 = arith.mulf %10, %110 : vector<8x256xf32>
    %c48_83 = arith.constant 48 : index
    %c512_84 = arith.constant 512 : index
    %112 = vector.load %arg9[%c48_83, %c512_84] : memref<144x768xf32, #tpu.memory_space<vmem>>, vector<8x256xf32>
    tpu.vector_store %arg9[%c48_83, %c512_84], %111 {strides = array<i32>} : memref<144x768xf32, #tpu.memory_space<vmem>>, vector<8x256xf32>,
    %113 = vector.extract_strided_slice %93 {offsets = [16, 0], sizes = [8, 256], strides = [1, 1]} : vector<24x256xf32> to vector<8x256xf32>
    %c56_85 = arith.constant 56 : index
    %c512_86 = arith.constant 512 : index
    %114 = vector.load %arg9[%c56_85, %c512_86] : memref<144x768xf32, #tpu.memory_space<vmem>>, vector<8x256xf32>
    tpu.vector_store %arg9[%c56_85, %c512_86], %113 {strides = array<i32>} : memref<144x768xf32, #tpu.memory_space<vmem>>, vector<8x256xf32>,
    %c0_87 = arith.constant 0 : index
    %c4 = arith.constant 4 : index
    %c0_88 = arith.constant 0 : index
    %115 = vector.load %arg3[%c0_87, %c4, %c0_88] : memref<1x27x256xf32, #tpu.memory_space<vmem>>, vector<1x1x256xf32>
    %116 = vector.shape_cast %115 : vector<1x1x256xf32> to vector<1x256xf32>
    %117 = vector.broadcast %116 : vector<1x256xf32> to vector<8x256xf32>
    %118 = arith.mulf %1, %117 : vector<8x256xf32>
    %c64 = arith.constant 64 : index
    %c0_89 = arith.constant 0 : index
    %119 = vector.load %arg9[%c64, %c0_89] : memref<144x768xf32, #tpu.memory_space<vmem>>, vector<8x256xf32>
    tpu.vector_store %arg9[%c64, %c0_89], %118 {strides = array<i32>} : memref<144x768xf32, #tpu.memory_space<vmem>>, vector<8x256xf32>,
    %120 = vector.extract_strided_slice %3 {offsets = [0, 0], sizes = [8, 256], strides = [1, 1]} : vector<24x256xf32> to vector<8x256xf32>
    %c72 = arith.constant 72 : index
    %c0_90 = arith.constant 0 : index
    %121 = vector.load %arg9[%c72, %c0_90] : memref<144x768xf32, #tpu.memory_space<vmem>>, vector<8x256xf32>
    tpu.vector_store %arg9[%c72, %c0_90], %120 {strides = array<i32>} : memref<144x768xf32, #tpu.memory_space<vmem>>, vector<8x256xf32>,
    %c0_91 = arith.constant 0 : index
    %c13 = arith.constant 13 : index
    %c0_92 = arith.constant 0 : index
    %122 = vector.load %arg3[%c0_91, %c13, %c0_92] : memref<1x27x256xf32, #tpu.memory_space<vmem>>, vector<1x1x256xf32>
    %123 = vector.shape_cast %122 : vector<1x1x256xf32> to vector<1x256xf32>
    %124 = vector.broadcast %123 : vector<1x256xf32> to vector<8x256xf32>
    %125 = arith.mulf %1, %124 : vector<8x256xf32>
    %c64_93 = arith.constant 64 : index
    %c256_94 = arith.constant 256 : index
    %126 = vector.load %arg9[%c64_93, %c256_94] : memref<144x768xf32, #tpu.memory_space<vmem>>, vector<8x256xf32>
    tpu.vector_store %arg9[%c64_93, %c256_94], %125 {strides = array<i32>} : memref<144x768xf32, #tpu.memory_space<vmem>>, vector<8x256xf32>,
    %127 = vector.extract_strided_slice %3 {offsets = [8, 0], sizes = [8, 256], strides = [1, 1]} : vector<24x256xf32> to vector<8x256xf32>
    %c72_95 = arith.constant 72 : index
    %c256_96 = arith.constant 256 : index
    %128 = vector.load %arg9[%c72_95, %c256_96] : memref<144x768xf32, #tpu.memory_space<vmem>>, vector<8x256xf32>
    tpu.vector_store %arg9[%c72_95, %c256_96], %127 {strides = array<i32>} : memref<144x768xf32, #tpu.memory_space<vmem>>, vector<8x256xf32>,
    %c0_97 = arith.constant 0 : index
    %c22 = arith.constant 22 : index
    %c0_98 = arith.constant 0 : index
    %129 = vector.load %arg3[%c0_97, %c22, %c0_98] : memref<1x27x256xf32, #tpu.memory_space<vmem>>, vector<1x1x256xf32>
    %130 = vector.shape_cast %129 : vector<1x1x256xf32> to vector<1x256xf32>
    %131 = vector.broadcast %130 : vector<1x256xf32> to vector<8x256xf32>
    %132 = arith.mulf %1, %131 : vector<8x256xf32>
    %c64_99 = arith.constant 64 : index
    %c512_100 = arith.constant 512 : index
    %133 = vector.load %arg9[%c64_99, %c512_100] : memref<144x768xf32, #tpu.memory_space<vmem>>, vector<8x256xf32>
    tpu.vector_store %arg9[%c64_99, %c512_100], %132 {strides = array<i32>} : memref<144x768xf32, #tpu.memory_space<vmem>>, vector<8x256xf32>,
    %134 = vector.extract_strided_slice %3 {offsets = [16, 0], sizes = [8, 256], strides = [1, 1]} : vector<24x256xf32> to vector<8x256xf32>
    %c72_101 = arith.constant 72 : index
    %c512_102 = arith.constant 512 : index
    %135 = vector.load %arg9[%c72_101, %c512_102] : memref<144x768xf32, #tpu.memory_space<vmem>>, vector<8x256xf32>
    tpu.vector_store %arg9[%c72_101, %c512_102], %134 {strides = array<i32>} : memref<144x768xf32, #tpu.memory_space<vmem>>, vector<8x256xf32>,
    %c255_i32_103 = arith.constant 255 : i32
    %136 = tpu.dynamic_rotate %3 by %c255_i32_103 dim 1 : vector<24x256xf32>, i32 -> vector<24x256xf32>
    %c5 = arith.constant 5 : index
    %c0_104 = arith.constant 0 : index
    %137 = vector.load %arg4[%c5, %c0_104] : memref<9x256xf32, #tpu.memory_space<vmem>>, vector<1x256xf32>
    %138 = vector.broadcast %137 : vector<1x256xf32> to vector<24x256xf32>
    %139 = arith.mulf %136, %138 : vector<24x256xf32>
    %c0_105 = arith.constant 0 : index
    %c5_106 = arith.constant 5 : index
    %c0_107 = arith.constant 0 : index
    %140 = vector.load %arg3[%c0_105, %c5_106, %c0_107] : memref<1x27x256xf32, #tpu.memory_space<vmem>>, vector<1x1x256xf32>
    %141 = vector.shape_cast %140 : vector<1x1x256xf32> to vector<1x256xf32>
    %142 = vector.broadcast %141 : vector<1x256xf32> to vector<8x256xf32>
    %143 = arith.mulf %11, %142 : vector<8x256xf32>
    %c80 = arith.constant 80 : index
    %c0_108 = arith.constant 0 : index
    %144 = vector.load %arg9[%c80, %c0_108] : memref<144x768xf32, #tpu.memory_space<vmem>>, vector<8x256xf32>
    tpu.vector_store %arg9[%c80, %c0_108], %143 {strides = array<i32>} : memref<144x768xf32, #tpu.memory_space<vmem>>, vector<8x256xf32>,
    %145 = vector.extract_strided_slice %139 {offsets = [0, 0], sizes = [8, 256], strides = [1, 1]} : vector<24x256xf32> to vector<8x256xf32>
    %c88 = arith.constant 88 : index
    %c0_109 = arith.constant 0 : index
    %146 = vector.load %arg9[%c88, %c0_109] : memref<144x768xf32, #tpu.memory_space<vmem>>, vector<8x256xf32>
    tpu.vector_store %arg9[%c88, %c0_109], %145 {strides = array<i32>} : memref<144x768xf32, #tpu.memory_space<vmem>>, vector<8x256xf32>,
    %c0_110 = arith.constant 0 : index
    %c14 = arith.constant 14 : index
    %c0_111 = arith.constant 0 : index
    %147 = vector.load %arg3[%c0_110, %c14, %c0_111] : memref<1x27x256xf32, #tpu.memory_space<vmem>>, vector<1x1x256xf32>
    %148 = vector.shape_cast %147 : vector<1x1x256xf32> to vector<1x256xf32>
    %149 = vector.broadcast %148 : vector<1x256xf32> to vector<8x256xf32>
    %150 = arith.mulf %11, %149 : vector<8x256xf32>
    %c80_112 = arith.constant 80 : index
    %c256_113 = arith.constant 256 : index
    %151 = vector.load %arg9[%c80_112, %c256_113] : memref<144x768xf32, #tpu.memory_space<vmem>>, vector<8x256xf32>
    tpu.vector_store %arg9[%c80_112, %c256_113], %150 {strides = array<i32>} : memref<144x768xf32, #tpu.memory_space<vmem>>, vector<8x256xf32>,
    %152 = vector.extract_strided_slice %139 {offsets = [8, 0], sizes = [8, 256], strides = [1, 1]} : vector<24x256xf32> to vector<8x256xf32>
    %c88_114 = arith.constant 88 : index
    %c256_115 = arith.constant 256 : index
    %153 = vector.load %arg9[%c88_114, %c256_115] : memref<144x768xf32, #tpu.memory_space<vmem>>, vector<8x256xf32>
    tpu.vector_store %arg9[%c88_114, %c256_115], %152 {strides = array<i32>} : memref<144x768xf32, #tpu.memory_space<vmem>>, vector<8x256xf32>,
    %c0_116 = arith.constant 0 : index
    %c23 = arith.constant 23 : index
    %c0_117 = arith.constant 0 : index
    %154 = vector.load %arg3[%c0_116, %c23, %c0_117] : memref<1x27x256xf32, #tpu.memory_space<vmem>>, vector<1x1x256xf32>
    %155 = vector.shape_cast %154 : vector<1x1x256xf32> to vector<1x256xf32>
    %156 = vector.broadcast %155 : vector<1x256xf32> to vector<8x256xf32>
    %157 = arith.mulf %11, %156 : vector<8x256xf32>
    %c80_118 = arith.constant 80 : index
    %c512_119 = arith.constant 512 : index
    %158 = vector.load %arg9[%c80_118, %c512_119] : memref<144x768xf32, #tpu.memory_space<vmem>>, vector<8x256xf32>
    tpu.vector_store %arg9[%c80_118, %c512_119], %157 {strides = array<i32>} : memref<144x768xf32, #tpu.memory_space<vmem>>, vector<8x256xf32>,
    %159 = vector.extract_strided_slice %139 {offsets = [16, 0], sizes = [8, 256], strides = [1, 1]} : vector<24x256xf32> to vector<8x256xf32>
    %c88_120 = arith.constant 88 : index
    %c512_121 = arith.constant 512 : index
    %160 = vector.load %arg9[%c88_120, %c512_121] : memref<144x768xf32, #tpu.memory_space<vmem>>, vector<8x256xf32>
    tpu.vector_store %arg9[%c88_120, %c512_121], %159 {strides = array<i32>} : memref<144x768xf32, #tpu.memory_space<vmem>>, vector<8x256xf32>,
    %c241_i32_122 = arith.constant 241 : i32
    %161 = tpu.dynamic_rotate %3 by %c241_i32_122 dim 1 : vector<24x256xf32>, i32 -> vector<24x256xf32>
    %c6 = arith.constant 6 : index
    %c0_123 = arith.constant 0 : index
    %162 = vector.load %arg4[%c6, %c0_123] : memref<9x256xf32, #tpu.memory_space<vmem>>, vector<1x256xf32>
    %163 = vector.broadcast %162 : vector<1x256xf32> to vector<24x256xf32>
    %164 = arith.mulf %161, %163 : vector<24x256xf32>
    %c0_124 = arith.constant 0 : index
    %c6_125 = arith.constant 6 : index
    %c0_126 = arith.constant 0 : index
    %165 = vector.load %arg3[%c0_124, %c6_125, %c0_126] : memref<1x27x256xf32, #tpu.memory_space<vmem>>, vector<1x1x256xf32>
    %166 = vector.shape_cast %165 : vector<1x1x256xf32> to vector<1x256xf32>
    %167 = vector.broadcast %166 : vector<1x256xf32> to vector<8x256xf32>
    %168 = arith.mulf %12, %167 : vector<8x256xf32>
    %c96 = arith.constant 96 : index
    %c0_127 = arith.constant 0 : index
    %169 = vector.load %arg9[%c96, %c0_127] : memref<144x768xf32, #tpu.memory_space<vmem>>, vector<8x256xf32>
    tpu.vector_store %arg9[%c96, %c0_127], %168 {strides = array<i32>} : memref<144x768xf32, #tpu.memory_space<vmem>>, vector<8x256xf32>,
    %170 = vector.extract_strided_slice %164 {offsets = [0, 0], sizes = [8, 256], strides = [1, 1]} : vector<24x256xf32> to vector<8x256xf32>
    %c104 = arith.constant 104 : index
    %c0_128 = arith.constant 0 : index
    %171 = vector.load %arg9[%c104, %c0_128] : memref<144x768xf32, #tpu.memory_space<vmem>>, vector<8x256xf32>
    tpu.vector_store %arg9[%c104, %c0_128], %170 {strides = array<i32>} : memref<144x768xf32, #tpu.memory_space<vmem>>, vector<8x256xf32>,
    %c0_129 = arith.constant 0 : index
    %c15 = arith.constant 15 : index
    %c0_130 = arith.constant 0 : index
    %172 = vector.load %arg3[%c0_129, %c15, %c0_130] : memref<1x27x256xf32, #tpu.memory_space<vmem>>, vector<1x1x256xf32>
    %173 = vector.shape_cast %172 : vector<1x1x256xf32> to vector<1x256xf32>
    %174 = vector.broadcast %173 : vector<1x256xf32> to vector<8x256xf32>
    %175 = arith.mulf %12, %174 : vector<8x256xf32>
    %c96_131 = arith.constant 96 : index
    %c256_132 = arith.constant 256 : index
    %176 = vector.load %arg9[%c96_131, %c256_132] : memref<144x768xf32, #tpu.memory_space<vmem>>, vector<8x256xf32>
    tpu.vector_store %arg9[%c96_131, %c256_132], %175 {strides = array<i32>} : memref<144x768xf32, #tpu.memory_space<vmem>>, vector<8x256xf32>,
    %177 = vector.extract_strided_slice %164 {offsets = [8, 0], sizes = [8, 256], strides = [1, 1]} : vector<24x256xf32> to vector<8x256xf32>
    %c104_133 = arith.constant 104 : index
    %c256_134 = arith.constant 256 : index
    %178 = vector.load %arg9[%c104_133, %c256_134] : memref<144x768xf32, #tpu.memory_space<vmem>>, vector<8x256xf32>
    tpu.vector_store %arg9[%c104_133, %c256_134], %177 {strides = array<i32>} : memref<144x768xf32, #tpu.memory_space<vmem>>, vector<8x256xf32>,
    %c0_135 = arith.constant 0 : index
    %c24_136 = arith.constant 24 : index
    %c0_137 = arith.constant 0 : index
    %179 = vector.load %arg3[%c0_135, %c24_136, %c0_137] : memref<1x27x256xf32, #tpu.memory_space<vmem>>, vector<1x1x256xf32>
    %180 = vector.shape_cast %179 : vector<1x1x256xf32> to vector<1x256xf32>
    %181 = vector.broadcast %180 : vector<1x256xf32> to vector<8x256xf32>
    %182 = arith.mulf %12, %181 : vector<8x256xf32>
    %c96_138 = arith.constant 96 : index
    %c512_139 = arith.constant 512 : index
    %183 = vector.load %arg9[%c96_138, %c512_139] : memref<144x768xf32, #tpu.memory_space<vmem>>, vector<8x256xf32>
    tpu.vector_store %arg9[%c96_138, %c512_139], %182 {strides = array<i32>} : memref<144x768xf32, #tpu.memory_space<vmem>>, vector<8x256xf32>,
    %184 = vector.extract_strided_slice %164 {offsets = [16, 0], sizes = [8, 256], strides = [1, 1]} : vector<24x256xf32> to vector<8x256xf32>
    %c104_140 = arith.constant 104 : index
    %c512_141 = arith.constant 512 : index
    %185 = vector.load %arg9[%c104_140, %c512_141] : memref<144x768xf32, #tpu.memory_space<vmem>>, vector<8x256xf32>
    tpu.vector_store %arg9[%c104_140, %c512_141], %184 {strides = array<i32>} : memref<144x768xf32, #tpu.memory_space<vmem>>, vector<8x256xf32>,
    %c240_i32_142 = arith.constant 240 : i32
    %186 = tpu.dynamic_rotate %3 by %c240_i32_142 dim 1 : vector<24x256xf32>, i32 -> vector<24x256xf32>
    %c7 = arith.constant 7 : index
    %c0_143 = arith.constant 0 : index
    %187 = vector.load %arg4[%c7, %c0_143] : memref<9x256xf32, #tpu.memory_space<vmem>>, vector<1x256xf32>
    %188 = vector.broadcast %187 : vector<1x256xf32> to vector<24x256xf32>
    %189 = arith.mulf %186, %188 : vector<24x256xf32>
    %c0_144 = arith.constant 0 : index
    %c7_145 = arith.constant 7 : index
    %c0_146 = arith.constant 0 : index
    %190 = vector.load %arg3[%c0_144, %c7_145, %c0_146] : memref<1x27x256xf32, #tpu.memory_space<vmem>>, vector<1x1x256xf32>
    %191 = vector.shape_cast %190 : vector<1x1x256xf32> to vector<1x256xf32>
    %192 = vector.broadcast %191 : vector<1x256xf32> to vector<8x256xf32>
    %193 = arith.mulf %13, %192 : vector<8x256xf32>
    %c112 = arith.constant 112 : index
    %c0_147 = arith.constant 0 : index
    %194 = vector.load %arg9[%c112, %c0_147] : memref<144x768xf32, #tpu.memory_space<vmem>>, vector<8x256xf32>
    tpu.vector_store %arg9[%c112, %c0_147], %193 {strides = array<i32>} : memref<144x768xf32, #tpu.memory_space<vmem>>, vector<8x256xf32>,
    %195 = vector.extract_strided_slice %189 {offsets = [0, 0], sizes = [8, 256], strides = [1, 1]} : vector<24x256xf32> to vector<8x256xf32>
    %c120 = arith.constant 120 : index
    %c0_148 = arith.constant 0 : index
    %196 = vector.load %arg9[%c120, %c0_148] : memref<144x768xf32, #tpu.memory_space<vmem>>, vector<8x256xf32>
    tpu.vector_store %arg9[%c120, %c0_148], %195 {strides = array<i32>} : memref<144x768xf32, #tpu.memory_space<vmem>>, vector<8x256xf32>,
    %c0_149 = arith.constant 0 : index
    %c16_150 = arith.constant 16 : index
    %c0_151 = arith.constant 0 : index
    %197 = vector.load %arg3[%c0_149, %c16_150, %c0_151] : memref<1x27x256xf32, #tpu.memory_space<vmem>>, vector<1x1x256xf32>
    %198 = vector.shape_cast %197 : vector<1x1x256xf32> to vector<1x256xf32>
    %199 = vector.broadcast %198 : vector<1x256xf32> to vector<8x256xf32>
    %200 = arith.mulf %13, %199 : vector<8x256xf32>
    %c112_152 = arith.constant 112 : index
    %c256_153 = arith.constant 256 : index
    %201 = vector.load %arg9[%c112_152, %c256_153] : memref<144x768xf32, #tpu.memory_space<vmem>>, vector<8x256xf32>
    tpu.vector_store %arg9[%c112_152, %c256_153], %200 {strides = array<i32>} : memref<144x768xf32, #tpu.memory_space<vmem>>, vector<8x256xf32>,
    %202 = vector.extract_strided_slice %189 {offsets = [8, 0], sizes = [8, 256], strides = [1, 1]} : vector<24x256xf32> to vector<8x256xf32>
    %c120_154 = arith.constant 120 : index
    %c256_155 = arith.constant 256 : index
    %203 = vector.load %arg9[%c120_154, %c256_155] : memref<144x768xf32, #tpu.memory_space<vmem>>, vector<8x256xf32>
    tpu.vector_store %arg9[%c120_154, %c256_155], %202 {strides = array<i32>} : memref<144x768xf32, #tpu.memory_space<vmem>>, vector<8x256xf32>,
    %c0_156 = arith.constant 0 : index
    %c25 = arith.constant 25 : index
    %c0_157 = arith.constant 0 : index
    %204 = vector.load %arg3[%c0_156, %c25, %c0_157] : memref<1x27x256xf32, #tpu.memory_space<vmem>>, vector<1x1x256xf32>
    %205 = vector.shape_cast %204 : vector<1x1x256xf32> to vector<1x256xf32>
    %206 = vector.broadcast %205 : vector<1x256xf32> to vector<8x256xf32>
    %207 = arith.mulf %13, %206 : vector<8x256xf32>
    %c112_158 = arith.constant 112 : index
    %c512_159 = arith.constant 512 : index
    %208 = vector.load %arg9[%c112_158, %c512_159] : memref<144x768xf32, #tpu.memory_space<vmem>>, vector<8x256xf32>
    tpu.vector_store %arg9[%c112_158, %c512_159], %207 {strides = array<i32>} : memref<144x768xf32, #tpu.memory_space<vmem>>, vector<8x256xf32>,
    %209 = vector.extract_strided_slice %189 {offsets = [16, 0], sizes = [8, 256], strides = [1, 1]} : vector<24x256xf32> to vector<8x256xf32>
    %c120_160 = arith.constant 120 : index
    %c512_161 = arith.constant 512 : index
    %210 = vector.load %arg9[%c120_160, %c512_161] : memref<144x768xf32, #tpu.memory_space<vmem>>, vector<8x256xf32>
    tpu.vector_store %arg9[%c120_160, %c512_161], %209 {strides = array<i32>} : memref<144x768xf32, #tpu.memory_space<vmem>>, vector<8x256xf32>,
    %c239_i32_162 = arith.constant 239 : i32
    %211 = tpu.dynamic_rotate %3 by %c239_i32_162 dim 1 : vector<24x256xf32>, i32 -> vector<24x256xf32>
    %c8_163 = arith.constant 8 : index
    %c0_164 = arith.constant 0 : index
    %212 = vector.load %arg4[%c8_163, %c0_164] : memref<9x256xf32, #tpu.memory_space<vmem>>, vector<1x256xf32>
    %213 = vector.broadcast %212 : vector<1x256xf32> to vector<24x256xf32>
    %214 = arith.mulf %211, %213 : vector<24x256xf32>
    %c0_165 = arith.constant 0 : index
    %c8_166 = arith.constant 8 : index
    %c0_167 = arith.constant 0 : index
    %215 = vector.load %arg3[%c0_165, %c8_166, %c0_167] : memref<1x27x256xf32, #tpu.memory_space<vmem>>, vector<1x1x256xf32>
    %216 = vector.shape_cast %215 : vector<1x1x256xf32> to vector<1x256xf32>
    %217 = vector.broadcast %216 : vector<1x256xf32> to vector<8x256xf32>
    %218 = arith.mulf %14, %217 : vector<8x256xf32>
    %c128 = arith.constant 128 : index
    %c0_168 = arith.constant 0 : index
    %219 = vector.load %arg9[%c128, %c0_168] : memref<144x768xf32, #tpu.memory_space<vmem>>, vector<8x256xf32>
    tpu.vector_store %arg9[%c128, %c0_168], %218 {strides = array<i32>} : memref<144x768xf32, #tpu.memory_space<vmem>>, vector<8x256xf32>,
    %220 = vector.extract_strided_slice %214 {offsets = [0, 0], sizes = [8, 256], strides = [1, 1]} : vector<24x256xf32> to vector<8x256xf32>
    %c136 = arith.constant 136 : index
    %c0_169 = arith.constant 0 : index
    %221 = vector.load %arg9[%c136, %c0_169] : memref<144x768xf32, #tpu.memory_space<vmem>>, vector<8x256xf32>
    tpu.vector_store %arg9[%c136, %c0_169], %220 {strides = array<i32>} : memref<144x768xf32, #tpu.memory_space<vmem>>, vector<8x256xf32>,
    %c0_170 = arith.constant 0 : index
    %c17 = arith.constant 17 : index
    %c0_171 = arith.constant 0 : index
    %222 = vector.load %arg3[%c0_170, %c17, %c0_171] : memref<1x27x256xf32, #tpu.memory_space<vmem>>, vector<1x1x256xf32>
    %223 = vector.shape_cast %222 : vector<1x1x256xf32> to vector<1x256xf32>
    %224 = vector.broadcast %223 : vector<1x256xf32> to vector<8x256xf32>
    %225 = arith.mulf %14, %224 : vector<8x256xf32>
    %c128_172 = arith.constant 128 : index
    %c256_173 = arith.constant 256 : index
    %226 = vector.load %arg9[%c128_172, %c256_173] : memref<144x768xf32, #tpu.memory_space<vmem>>, vector<8x256xf32>
    tpu.vector_store %arg9[%c128_172, %c256_173], %225 {strides = array<i32>} : memref<144x768xf32, #tpu.memory_space<vmem>>, vector<8x256xf32>,
    %227 = vector.extract_strided_slice %214 {offsets = [8, 0], sizes = [8, 256], strides = [1, 1]} : vector<24x256xf32> to vector<8x256xf32>
    %c136_174 = arith.constant 136 : index
    %c256_175 = arith.constant 256 : index
    %228 = vector.load %arg9[%c136_174, %c256_175] : memref<144x768xf32, #tpu.memory_space<vmem>>, vector<8x256xf32>
    tpu.vector_store %arg9[%c136_174, %c256_175], %227 {strides = array<i32>} : memref<144x768xf32, #tpu.memory_space<vmem>>, vector<8x256xf32>,
    %c0_176 = arith.constant 0 : index
    %c26 = arith.constant 26 : index
    %c0_177 = arith.constant 0 : index
    %229 = vector.load %arg3[%c0_176, %c26, %c0_177] : memref<1x27x256xf32, #tpu.memory_space<vmem>>, vector<1x1x256xf32>
    %230 = vector.shape_cast %229 : vector<1x1x256xf32> to vector<1x256xf32>
    %231 = vector.broadcast %230 : vector<1x256xf32> to vector<8x256xf32>
    %232 = arith.mulf %14, %231 : vector<8x256xf32>
    %c128_178 = arith.constant 128 : index
    %c512_179 = arith.constant 512 : index
    %233 = vector.load %arg9[%c128_178, %c512_179] : memref<144x768xf32, #tpu.memory_space<vmem>>, vector<8x256xf32>
    tpu.vector_store %arg9[%c128_178, %c512_179], %232 {strides = array<i32>} : memref<144x768xf32, #tpu.memory_space<vmem>>, vector<8x256xf32>,
    %234 = vector.extract_strided_slice %214 {offsets = [16, 0], sizes = [8, 256], strides = [1, 1]} : vector<24x256xf32> to vector<8x256xf32>
    %c136_180 = arith.constant 136 : index
    %c512_181 = arith.constant 512 : index
    %235 = vector.load %arg9[%c136_180, %c512_181] : memref<144x768xf32, #tpu.memory_space<vmem>>, vector<8x256xf32>
    tpu.vector_store %arg9[%c136_180, %c512_181], %234 {strides = array<i32>} : memref<144x768xf32, #tpu.memory_space<vmem>>, vector<8x256xf32>,
    %c0_182 = arith.constant 0 : index
    %c0_183 = arith.constant 0 : index
    %236 = vector.load %arg9[%c0_182, %c0_183] : memref<144x768xf32, #tpu.memory_space<vmem>>, vector<144x768xf32>
    %cst = arith.constant dense<0.000000e+00> : vector<8x768xf32>
    %237 = tpu.matmul %4, %236, %cst {dimension_numbers = #tpu.dot_dimension_numbers<[1], [0], [0], [1], [0, 0, 1, 1], [], []>} : vector<8x144xf32>, vector<144x768xf32>, vector<8x768xf32> -> vector<8x768xf32>
    %238 = vector.broadcast %5 : vector<8x1xf32> to vector<8x768xf32>
    %239 = arith.mulf %237, %238 : vector<8x768xf32>
    %240 = vector.broadcast %6 : vector<8x1xf32> to vector<8x768xf32>
    %241 = arith.addf %239, %240 : vector<8x768xf32>
    %cst_184 = arith.constant 0.000000e+00 : f32
    %242 = vector.broadcast %cst_184 : f32 to vector<8x768xf32>
    %243 = arith.maximumf %241, %242 : vector<8x768xf32>
    %244 = vector.extract_strided_slice %243 {offsets = [0, 0], sizes = [8, 256], strides = [1, 1]} : vector<8x768xf32> to vector<8x256xf32>
    %c0_185 = arith.constant 0 : index
    %c0_186 = arith.constant 0 : index
    %c0_187 = arith.constant 0 : index
    %245 = vector.load %arg8[%c0_185, %c0_186, %c0_187] : memref<1x24x256xf32, #tpu.memory_space<vmem>>, vector<1x8x256xf32>
    %246 = vector.shape_cast %245 : vector<1x8x256xf32> to vector<8x256xf32>
    %247 = vector.shape_cast %244 : vector<8x256xf32> to vector<1x8x256xf32>
    tpu.vector_store %arg8[%c0_185, %c0_186, %c0_187], %247 {strides = array<i32>} : memref<1x24x256xf32, #tpu.memory_space<vmem>>, vector<1x8x256xf32>,
    %248 = vector.extract_strided_slice %243 {offsets = [0, 256], sizes = [8, 256], strides = [1, 1]} : vector<8x768xf32> to vector<8x256xf32>
    %c0_188 = arith.constant 0 : index
    %c8_189 = arith.constant 8 : index
    %c0_190 = arith.constant 0 : index
    %249 = vector.load %arg8[%c0_188, %c8_189, %c0_190] : memref<1x24x256xf32, #tpu.memory_space<vmem>>, vector<1x8x256xf32>
    %250 = vector.shape_cast %249 : vector<1x8x256xf32> to vector<8x256xf32>
    %251 = vector.shape_cast %248 : vector<8x256xf32> to vector<1x8x256xf32>
    tpu.vector_store %arg8[%c0_188, %c8_189, %c0_190], %251 {strides = array<i32>} : memref<1x24x256xf32, #tpu.memory_space<vmem>>, vector<1x8x256xf32>,
    %252 = vector.extract_strided_slice %243 {offsets = [0, 512], sizes = [8, 256], strides = [1, 1]} : vector<8x768xf32> to vector<8x256xf32>
    %c0_191 = arith.constant 0 : index
    %c16_192 = arith.constant 16 : index
    %c0_193 = arith.constant 0 : index
    %253 = vector.load %arg8[%c0_191, %c16_192, %c0_193] : memref<1x24x256xf32, #tpu.memory_space<vmem>>, vector<1x8x256xf32>
    %254 = vector.shape_cast %253 : vector<1x8x256xf32> to vector<8x256xf32>
    %255 = vector.shape_cast %252 : vector<8x256xf32> to vector<1x8x256xf32>
    tpu.vector_store %arg8[%c0_191, %c16_192, %c0_193], %255 {strides = array<i32>} : memref<1x24x256xf32, #tpu.memory_space<vmem>>, vector<1x8x256xf32>,
    return
  }
  func.func @transform_0(%arg0: i32) -> (i32, i32, i32) {
    %c0_i32 = arith.constant 0 : i32
    %c0_i32_0 = arith.constant 0 : i32
    %c0_i32_1 = arith.constant 0 : i32
    return %arg0, %c0_i32, %c0_i32_0 : i32, i32, i32
  }
  func.func @transform_1(%arg0: i32) -> (i32, i32, i32) {
    %c0_i32 = arith.constant 0 : i32
    %c0_i32_0 = arith.constant 0 : i32
    %c0_i32_1 = arith.constant 0 : i32
    return %arg0, %c0_i32, %c0_i32_0 : i32, i32, i32
  }
  func.func @transform_2(%arg0: i32) -> (i32, i32, i32) {
    %c0_i32 = arith.constant 0 : i32
    %c0_i32_0 = arith.constant 0 : i32
    %c0_i32_1 = arith.constant 0 : i32
    return %arg0, %c0_i32, %c0_i32_0 : i32, i32, i32
  }
  func.func @transform_3(%arg0: i32) -> (i32, i32) {
    %c0_i32 = arith.constant 0 : i32
    %c0_i32_0 = arith.constant 0 : i32
    %c0_i32_1 = arith.constant 0 : i32
    return %c0_i32, %c0_i32_0 : i32, i32
  }
  func.func @transform_4(%arg0: i32) -> (i32, i32) {
    %c0_i32 = arith.constant 0 : i32
    %c0_i32_0 = arith.constant 0 : i32
    %c0_i32_1 = arith.constant 0 : i32
    return %c0_i32, %c0_i32_0 : i32, i32
  }
  func.func @transform_5(%arg0: i32) -> (i32, i32) {
    %c0_i32 = arith.constant 0 : i32
    %c0_i32_0 = arith.constant 0 : i32
    %c0_i32_1 = arith.constant 0 : i32
    return %c0_i32, %c0_i32_0 : i32, i32
  }
  func.func @transform_6(%arg0: i32) -> (i32, i32) {
    %c0_i32 = arith.constant 0 : i32
    %c0_i32_0 = arith.constant 0 : i32
    %c0_i32_1 = arith.constant 0 : i32
    return %c0_i32, %c0_i32_0 : i32, i32
  }
  func.func @transform_7(%arg0: i32) -> (i32, i32, i32) {
    %c0_i32 = arith.constant 0 : i32
    %c0_i32_0 = arith.constant 0 : i32
    %c0_i32_1 = arith.constant 0 : i32
    return %arg0, %c0_i32, %c0_i32_0 : i32, i32, i32
  }
}

</mosaic_0001>

<bundles_post_ra>
// kernel: decomposition_forward.1
= control target key start
LH: loop header
LB: loop body
LE: loop exit
PB: predicated region body
PF: predicated region fallthrough
CT: control target
= control target key end

     0   :  { %s1870_s24 = smov 0   ;;  %s2516_s0 = inlined_call_operand.vmem [shape: f32[2,8,256], index: 0, kind: input, shape index: {}]   ;;  %s2517_s1 = inlined_call_operand.vmem [shape: f32[2,24,256], index: 1, kind: input, shape index: {}]   ;;  %s2518_s2 = inlined_call_operand.vmem [shape: f32[2,27,256], index: 2, kind: input, shape index: {}]   ;;  %s2519_s3 = inlined_call_operand.vmem [shape: f32[9,256], index: 3, kind: input, shape index: {}]   ;;  %s2520_s4 = inlined_call_operand.vmem [shape: f32[8,144], index: 4, kind: input, shape index: {}]   ;;  %s2521_s5 = inlined_call_operand.vmem [shape: f32[8,1], index: 5, kind: input, shape index: {}]   ;;  %s2522_s6 = inlined_call_operand.vmem [shape: f32[8,1], index: 6, kind: input, shape index: {}]   ;;  %s2523_s7 = inlined_call_operand.vmem [shape: f32[2,24,256], index: 7, kind: output, shape index: {}]  }
   0x1 LB: > { %s1634_s25 = sadd.s32 4294967295, %s1819_s24   ;;  %p1638_p0 = scmp.ge.s32.totalorder %s1819_s24, 1  ;;  %s1819_s24 = sphi %s1870_s24, %s17_s24  }
   0x2   : > { %p257_p1 = scmp.lt.s32.totalorder %s1819_s24, 3 }
   0x4   : > { %p258_p2 = pnand %p1638_p0, %p257_p1 }
   0x5   : > { %p299_p3 = scmp.lt.s32.totalorder (!%p258_p2), %s1634_s25, 1  ;;  %s1821_s8 = smov (!%p258_p2), 16   ;;  %v1965_v4 = vld [vmem:[%s2520_s4 + $0x8] sm:$0xff] (!%p258_p2)  ;;  %vm1304_vm0 = vcmask (!%p258_p2), 130048   ;;  %v335_v9 = vlaneseq (!%p258_p2)  ;;  %v1829_v30 = vmov (!%p258_p2), 0   ;;  %v330_v43 = vld [vmem:[%s2522_s6] sm:$0xff] (!%p258_p2) }
   0x6   : > { %261 = sbr.rel (%p258_p2) target bundleno = 485 (0x1e5), region = 48  ;;  %s1822_s9 = smov (!%p258_p2), 17   ;;  %1678 = vmatprep.mubr.msk.f32.mxu0 (!%p258_p2), %vm1304_vm0, %v1965_v4  ;;  %1679 = vmatprep.mubr.msk.f32.mxu1 (!%p258_p2), %vm1304_vm0, %v1965_v4  ;;  %v407_v15 = vld [vmem:[%s2519_s3] ss:$8 sm:$0x3] (!%p258_p2) }
   0x7   : > { %s1823_s13 = smov (!%p258_p2), 15   ;;  %s1824_s14 = smov (!%p258_p2), 1   ;;  %v410_v10 = vshrl.u32 (!%p258_p2), %v335_v9, 7  ;;  %v2045_v13 = vand.u32 (!%p258_p2), 127, %v335_v9  ;;  %1811 = vset.pattern.permute.xlu0 (!%p258_p2), %v1829_v30  ;;  %1812 = vset.pattern.permute.xlu1 (!%p258_p2), %v1829_v30  ;;  %v329_v47 = vld [vmem:[%s2521_s5] sm:$0xff] (!%p258_p2) }
   0x8   : > { %s1825_s15 = smov (!%p258_p2), 127   ;;  %s1826_s16 = smov (!%p258_p2), 113   ;;  %v1647_v21 = vld [vmem:[%s2519_s3 + $0x1] ss:$8 sm:$0x3] (!%p258_p2) }
   0x9   : > { %s1827_s17 = smov (!%p258_p2), 112   ;;  %s1828_s18 = smov (!%p258_p2), 111   ;;  %v2051_v14 = vsub.s32 (!%p258_p2), 0, %v410_v10  ;;  %v2056_v16 = vsub.s32 (!%p258_p2), 1, %v410_v10  ;;  %vm337_vm1 = vcmp.lt.s32.totalorder (!%p258_p2), %v2045_v13, 17  ;;  %vm344_vm2 = vcmp.lt.s32.totalorder (!%p258_p2), %v2045_v13, 16 }
   0xa   : > { %v1651_v56 = vld [vmem:[%s2519_s3 + $0x2] ss:$8 sm:$0x3] (!%p258_p2)  ;;  %vm351_vm3 = vcmp.lt.s32.totalorder (!%p258_p2), %v2045_v13, 15  ;;  %vm358_vm4 = vcmp.lt.s32.totalorder (!%p258_p2), %v2045_v13, 1  ;;  %vm365_vm5 = vcmp.lt.s32.totalorder (!%p258_p2), %v2045_v13, 127 }
   0xb   : > { %v2065_v20 = vrot.slane (!%p258_p2), %v407_v15, %v2051_v14  ;;  %v2077_v25 = vrot.slane (!%p258_p2), %v407_v15, %v2056_v16  ;;  %v2090_v33 = vrot.slane (!%p258_p2), %v1647_v21, %v2051_v14  ;;  %v2093_v34 = vrot.slane (!%p258_p2), %v1647_v21, %v2056_v16 }
   0xc   : > { %v2135_v63 = vrot.slane (!%p258_p2), %v1651_v56, %v2051_v14  ;;  %v2138_v9 = vrot.slane (!%p258_p2), %v1651_v56, %v2056_v16  ;;  %v1662_v56 = vld [vmem:[%s2519_s3 + $0x5] ss:$8 sm:$0x3] (!%p258_p2)  ;;  %vm372_vm6 = vcmp.lt.s32.totalorder (!%p258_p2), %v2045_v13, 113  ;;  %vm379_vm7 = vcmp.lt.s32.totalorder (!%p258_p2), %v2045_v13, 112 }
   0xd   : > { %s2525_s25 = smov (!%p299_p3, %s1634_s25), 1  ;;  %vm386_vm8 = vcmp.lt.s32.totalorder %v2045_v13, 111 }
   0xe   : > { %s1683_s26 = sshll.u32 %s2525_s25, 4  ;;  %s1793_s30 = smul.u32 48, %s2525_s25 }
   0xf   : > { %s303_s29 = scalar_lea.vmem %s2516_s0, %s1683_s26  ;;  %s1684_s21 = sshll.u32 %s2525_s25, 6 }
  0x10   : > { %v1884_v0 = vld [vmem:[%s303_s29 + $0x8] sm:$0xff]  ;;  %v1886_v1 = vld [vmem:[%s303_s29] sm:$0xff]  ;;  %s1898_s12 = scalar_lea.vmem %s2517_s1, %s1793_s30  ;;  %s2043_s26 = scalar_lea.vmem %s2518_s2, %s1684_s21 }
  0x11   : > { %342 = vrot.lane.b32.xlu1 %v1884_v0, %s1821_s8  ;;  %331 = vrot.lane.b32.xlu0 %v1886_v1, %s1822_s9  ;;  %v1901_v2 = vld [vmem:[%s1898_s12] sm:$0xff]  ;;  %v1908_v3 = vld [vmem:[%s1898_s12 + $0x8] sm:$0xff] }
  0x12   : > { %v1976_v5 = vld [vmem:[%s1898_s12 + $0x20] sm:$0xff]  ;;  %v1979_v6 = vld [vmem:[%s1898_s12 + $0x10] sm:$0xff]  ;;  %v1986_v7 = vld [vmem:[%s1898_s12 + $0x28] sm:$0xff] }
  0x13   : > { %v1989_v8 = vld [vmem:[%s1898_s12 + $0x18] sm:$0xff]  ;;  %v425_v17 = vld [vmem:[%s2043_s26] ss:$8 sm:$0x3] }
  0x14   : > { %v430_v22 = vrot.slane %v425_v17, %v2051_v14  ;;  %v1648_v24 = vld [vmem:[%s2043_s26 + $0x1] ss:$8 sm:$0x3]  ;;  %v434_v26 = vrot.slane %v425_v17, %v2056_v16  ;;  %v1652_v55 = vld [vmem:[%s2043_s26 + $0x2] ss:$8 sm:$0x3] }
  0x15   : > { %389 = vrot.lane.b32.xlu1 %v1901_v2, %s1822_s9  ;;  %333 = vrot.lane.b32.xlu0 %v1884_v0, %s1822_s9  ;;  %v524_v36 = vrot.slane %v1648_v24, %v2051_v14  ;;  %v528_v37 = vrot.slane %v1648_v24, %v2056_v16  ;;  %v618_v61 = vrot.slane %v1652_v55, %v2051_v14 }
  0x16   : > { %v622_v62 = vrot.slane %v1652_v55, %v2056_v16  ;;  %v1663_v55 = vld [vmem:[%s2043_s26 + $0x5] ss:$8 sm:$0x3] }
  0x19   : > { %395 = vrot.lane.b32.xlu1 %v1908_v3, %s1822_s9  ;;  %340 = vrot.lane.b32.xlu0 %v1886_v1, %s1821_s8 }
  0x1d   : > { %487 = vrot.lane.b32.xlu1 %v1908_v3, %s1821_s8  ;;  %481 = vrot.lane.b32.xlu0 %v1901_v2, %s1821_s8 }
  0x21   : > { %349 = vrot.lane.b32.xlu1 %v1884_v0, %s1823_s13  ;;  %347 = vrot.lane.b32.xlu0 %v1886_v1, %s1823_s13 }
  0x25   : > { %581 = vrot.lane.b32.xlu1 %v1908_v3, %s1823_s13  ;;  %575 = vrot.lane.b32.xlu0 %v1901_v2, %s1823_s13 }
  0x29   : > { %356 = vrot.lane.b32.xlu1 %v1884_v0, %s1824_s14  ;;  %354 = vrot.lane.b32.xlu0 %v1886_v1, %s1824_s14 }
  0x2d   : > { %675 = vrot.lane.b32.xlu1 %v1908_v3, %s1824_s14  ;;  %669 = vrot.lane.b32.xlu0 %v1901_v2, %s1824_s14 }
  0x31   : > { %363 = vrot.lane.b32.xlu1 %v1884_v0, %s1825_s15  ;;  %361 = vrot.lane.b32.xlu0 %v1886_v1, %s1825_s15 }
  0x35   : > { %826 = vrot.lane.b32.xlu1 %v1908_v3, %s1825_s15  ;;  %820 = vrot.lane.b32.xlu0 %v1901_v2, %s1825_s15 }
  0x39   : > { %370 = vrot.lane.b32.xlu1 %v1884_v0, %s1826_s16  ;;  %368 = vrot.lane.b32.xlu0 %v1886_v1, %s1826_s16 }
  0x3d   : > { %920 = vrot.lane.b32.xlu1 %v1908_v3, %s1826_s16  ;;  %914 = vrot.lane.b32.xlu0 %v1901_v2, %s1826_s16 }
  0x41   : > { %377 = vrot.lane.b32.xlu1 %v1884_v0, %s1827_s17  ;;  %375 = vrot.lane.b32.xlu0 %v1886_v1, %s1827_s17 }
  0x45   : > { %1014 = vrot.lane.b32.xlu1 %v1908_v3, %s1827_s17  ;;  %1008 = vrot.lane.b32.xlu0 %v1901_v2, %s1827_s17 }
  0x49   : > { %384 = vrot.lane.b32.xlu1 %v1884_v0, %s1828_s18  ;;  %382 = vrot.lane.b32.xlu0 %v1886_v1, %s1828_s18 }
  0x4d   : > { %1108 = vrot.lane.b32.xlu1 %v1908_v3, %s1828_s18  ;;  %1102 = vrot.lane.b32.xlu0 %v1901_v2, %s1828_s18 }
  0x51   : > { %393 = vrot.lane.b32.xlu1 %v1976_v5, %s1822_s9  ;;  %391 = vrot.lane.b32.xlu0 %v1979_v6, %s1822_s9 }
  0x55   : > { %399 = vrot.lane.b32.xlu1 %v1986_v7, %s1822_s9  ;;  %397 = vrot.lane.b32.xlu0 %v1989_v8, %s1822_s9  ;;  %s318_s9 = scalar_lea.vmem %s2523_s7, %s1793_s30 }
  0x59   : > { %485 = vrot.lane.b32.xlu1 %v1976_v5, %s1821_s8  ;;  %483 = vrot.lane.b32.xlu0 %v1979_v6, %s1821_s8 }
  0x5d   : > { %491 = vrot.lane.b32.xlu1 %v1986_v7, %s1821_s8  ;;  %489 = vrot.lane.b32.xlu0 %v1989_v8, %s1821_s8 }
  0x61   : > { %579 = vrot.lane.b32.xlu1 %v1976_v5, %s1823_s13  ;;  %577 = vrot.lane.b32.xlu0 %v1979_v6, %s1823_s13 }
  0x65   : > { %585 = vrot.lane.b32.xlu1 %v1986_v7, %s1823_s13  ;;  %583 = vrot.lane.b32.xlu0 %v1989_v8, %s1823_s13 }
  0x69   : > { %673 = vrot.lane.b32.xlu1 %v1976_v5, %s1824_s14  ;;  %671 = vrot.lane.b32.xlu0 %v1979_v6, %s1824_s14 }
  0x6d   : > { %679 = vrot.lane.b32.xlu1 %v1986_v7, %s1824_s14  ;;  %677 = vrot.lane.b32.xlu0 %v1989_v8, %s1824_s14 }
  0x71   : > { %824 = vrot.lane.b32.xlu1 %v1976_v5, %s1825_s15  ;;  %822 = vrot.lane.b32.xlu0 %v1979_v6, %s1825_s15 }
  0x75   : > { %830 = vrot.lane.b32.xlu1 %v1986_v7, %s1825_s15  ;;  %828 = vrot.lane.b32.xlu0 %v1989_v8, %s1825_s15 }
  0x79   : > { %918 = vrot.lane.b32.xlu1 %v1976_v5, %s1826_s16  ;;  %916 = vrot.lane.b32.xlu0 %v1979_v6, %s1826_s16 }
  0x7d   : > { %924 = vrot.lane.b32.xlu1 %v1986_v7, %s1826_s16  ;;  %922 = vrot.lane.b32.xlu0 %v1989_v8, %s1826_s16 }
  0x81   : > { %1012 = vrot.lane.b32.xlu1 %v1976_v5, %s1827_s17  ;;  %1010 = vrot.lane.b32.xlu0 %v1979_v6, %s1827_s17 }
  0x83   : > { %v343_v11 = vpop.permute.xlu1 %342  ;;  %v332_v12 = vpop.permute.xlu0 %331 }
  0x85   : > { %1018 = vrot.lane.b32.xlu1 %v1986_v7, %s1827_s17  ;;  %1016 = vrot.lane.b32.xlu0 %v1989_v8, %s1827_s17 }
  0x87   : > { %v390_v18 = vpop.permute.xlu1 %389  ;;  %v334_v19 = vpop.permute.xlu0 %333 }
  0x88   : > { %v2073_v23 = vsel %vm337_vm1, %v334_v19, %v332_v12  ;;  %v2082_v27 = vsel %vm337_vm1, %v332_v12, %v334_v19  ;;  %v1659_v19 = vld [vmem:[%s2043_s26 + $0x4] ss:$8 sm:$0x3] }
  0x89   : > { %1106 = vrot.lane.b32.xlu1 %v1976_v5, %s1828_s18  ;;  %1104 = vrot.lane.b32.xlu0 %v1979_v6, %s1828_s18  ;;  %v437_v38 = vmul.f32 %v430_v22, %v2073_v23  ;;  %v438_v42 = vmul.f32 %v434_v26, %v2082_v27 }
  0x8b   : > { %v396_v28 = vpop.permute.xlu1 %395  ;;  %v341_v29 = vpop.permute.xlu0 %340 }
  0x8c   : > { %v401_v31 = vsel %vm337_vm1, %v390_v18, %v396_v28  ;;  %v404_v32 = vsel %vm337_vm1, %v396_v28, %v390_v18  ;;  %v2103_v39 = vsel %vm344_vm2, %v341_v29, %v343_v11  ;;  %v2107_v40 = vsel %vm344_vm2, %v343_v11, %v341_v29  ;;  %v1656_v28 = vld [vmem:[%s2043_s26 + $0x3] ss:$8 sm:$0x3] }
  0x8d   : > { %v419_v35 = vmul.f32 %v2065_v20, %v404_v32  ;;  %1112 = vrot.lane.b32.xlu1 %v1986_v7, %s1828_s18  ;;  %1110 = vrot.lane.b32.xlu0 %v1989_v8, %s1828_s18  ;;  %v420_v41 = vmul.f32 %v2077_v25, %v401_v31  ;;  %v531_v51 = vmul.f32 %v524_v36, %v2107_v40  ;;  %v1655_v29 = vld [vmem:[%s2519_s3 + $0x3] ss:$8 sm:$0x3] }
  0x8e   : > { %v532_v52 = vmul.f32 %v528_v37, %v2103_v39  ;;  %v773_v36 = vrot.slane %v1659_v19, %v2056_v16  ;;  %v712_v37 = vrot.slane %v1656_v28, %v2051_v14 }
  0x8f   : > { %v488_v44 = vpop.permute.xlu1 %487  ;;  %v482_v45 = vpop.permute.xlu0 %481  ;;  %v1687_v46 = vpack.c.bf16 %v419_v35, %v437_v38  ;;  %v1685_v50 = vpack.c.bf16 %v420_v41, %v438_v42  ;;  %v716_v38 = vrot.slane %v1656_v28, %v2056_v16  ;;  %v2166_v41 = vrot.slane %v1655_v29, %v2051_v14 }
  0x90   : > { %v493_v48 = vsel %vm344_vm2, %v482_v45, %v488_v44  ;;  %v496_v49 = vsel %vm344_vm2, %v488_v44, %v482_v45  ;;  %v2169_v42 = vrot.slane %v1655_v29, %v2056_v16  ;;  %v769_v45 = vrot.slane %v1659_v19, %v2051_v14 }
  0x91   : > { %v512_v53 = vmul.f32 %v2090_v33, %v496_v49  ;;  %v513_v54 = vmul.f32 %v2093_v34, %v493_v48  ;;  %1534 = vperm.xlu1 %1812, %v330_v43   ;;  %1686 = vmatprep.subr.bf16.mxu0 %v1685_v50  ;;  %v777_v48 = vmul.f32 %v773_v36, %v1884_v0 }
  0x92   : > { %1523 = vperm.xlu0 %1811, %v329_v47   ;;  %1688 = vmatpush1.bf16.msra.mxu0 %v1687_v46 }
  0x93   : > { %v350_v57 = vpop.permute.xlu1 %349  ;;  %v348_v58 = vpop.permute.xlu0 %347  ;;  %v1689_v59 = vpack.c.bf16 %v513_v54, %v532_v52  ;;  %v1691_v60 = vpack.c.bf16 %v512_v53, %v531_v51 }
  0x94   : > { %v2142_v10 = vsel %vm351_vm3, %v348_v58, %v350_v57  ;;  %v2146_v11 = vsel %vm351_vm3, %v350_v57, %v348_v58  ;;  %v776_v57 = vmul.f32 %v769_v45, %v1886_v1 }
  0x95   : > { %1690 = vmatprep.subr.bf16.mxu0 %v1689_v59  ;;  %v625_v21 = vmul.f32 %v618_v61, %v2146_v11  ;;  %v626_v22 = vmul.f32 %v622_v62, %v2142_v10  ;;  %v1701_v62 = vpack.c.bf16 %v1908_v3, %v777_v48 }
  0x96   : > { %1692 = vmatpush1.bf16.msra.mxu0 %v1691_v60  ;;  %v1703_v3 = vpack.c.bf16 %v1901_v2, %v776_v57  ;;  %v1666_v2 = vld [vmem:[%s2519_s3 + $0x6] ss:$8 sm:$0x3] }
  0x97   : > { %v582_v12 = vpop.permute.xlu1 %581  ;;  %v576_v15 = vpop.permute.xlu0 %575  ;;  %v2229_v48 = vrot.slane %v1666_v2, %v2051_v14 }
  0x98   : > { %v587_v17 = vsel %vm351_vm3, %v576_v15, %v582_v12  ;;  %v590_v18 = vsel %vm351_vm3, %v582_v12, %v576_v15  ;;  %v863_v12 = vrot.slane %v1663_v55, %v2051_v14  ;;  %v867_v15 = vrot.slane %v1663_v55, %v2056_v16 }
  0x99   : > { %v606_v24 = vmul.f32 %v2135_v63, %v590_v18  ;;  %v607_v26 = vmul.f32 %v2138_v9, %v587_v17  ;;  %v2199_v17 = vrot.slane %v1662_v56, %v2051_v14  ;;  %v2202_v18 = vrot.slane %v1662_v56, %v2056_v16 }
  0x9b   : > { %v357_v30 = vpop.permute.xlu1 %356  ;;  %v355_v31 = vpop.permute.xlu0 %354  ;;  %v1693_v32 = vpack.c.bf16 %v607_v26, %v626_v22  ;;  %v1695_v35 = vpack.c.bf16 %v606_v24, %v625_v21 }
  0x9c   : > { %v2173_v43 = vsel %vm358_vm4, %v355_v31, %v357_v30  ;;  %v2177_v44 = vsel %vm358_vm4, %v357_v30, %v355_v31 }
  0x9d   : > { %1694 = vmatprep.subr.bf16.mxu0 %v1693_v32  ;;  %v719_v51 = vmul.f32 %v712_v37, %v2177_v44  ;;  %v720_v52 = vmul.f32 %v716_v38, %v2173_v43 }
  0x9e   : > { %1696 = vmatpush1.bf16.msra.mxu0 %v1695_v35  ;;  %v1667_v35 = vld [vmem:[%s2043_s26 + $0x6] ss:$8 sm:$0x3] }
  0x9f   : > { %v676_v46 = vpop.permute.xlu1 %675  ;;  %v670_v47 = vpop.permute.xlu0 %669 }
  0xa0   : > { %v681_v49 = vsel %vm358_vm4, %v670_v47, %v676_v46  ;;  %v684_v50 = vsel %vm358_vm4, %v676_v46, %v670_v47  ;;  %v957_v46 = vrot.slane %v1667_v35, %v2051_v14  ;;  %v961_v47 = vrot.slane %v1667_v35, %v2056_v16 }
  0xa1   : > { %v700_v53 = vmul.f32 %v2166_v41, %v684_v50  ;;  %v701_v54 = vmul.f32 %v2169_v42, %v681_v49  ;;  %v2232_v49 = vrot.slane %v1666_v2, %v2056_v16 }
  0xa3   : > { %v364_v58 = vpop.permute.xlu1 %363  ;;  %v362_v59 = vpop.permute.xlu0 %361  ;;  %v1697_v60 = vpack.c.bf16 %v701_v54, %v720_v52  ;;  %v1699_v61 = vpack.c.bf16 %v700_v53, %v719_v51 }
  0xa4   : > { %v2206_v19 = vsel %vm365_vm5, %v362_v59, %v364_v58  ;;  %v2210_v21 = vsel %vm365_vm5, %v364_v58, %v362_v59 }
  0xa5   : > { %1698 = vmatprep.subr.bf16.mxu0 %v1697_v60  ;;  %v870_v29 = vmul.f32 %v863_v12, %v2206_v19  ;;  %v871_v30 = vmul.f32 %v867_v15, %v2210_v21  ;;  %v1671_v60 = vld [vmem:[%s2043_s26 + $0x7] ss:$8 sm:$0x3] }
  0xa6   : > { %1700 = vmatpush1.bf16.msra.mxu0 %v1699_v61  ;;  %v1670_v61 = vld [vmem:[%s2519_s3 + $0x7] ss:$8 sm:$0x3] }
  0xa7   : > { %v827_v22 = vpop.permute.xlu1 %826  ;;  %v821_v24 = vpop.permute.xlu0 %820  ;;  %1702 = vmatprep.subr.bf16.mxu0 %v1701_v62 }
  0xa8   : > { %v832_v26 = vsel %vm365_vm5, %v821_v24, %v827_v22  ;;  %v835_v28 = vsel %vm365_vm5, %v827_v22, %v821_v24  ;;  %v1051_v22 = vrot.slane %v1671_v60, %v2051_v14  ;;  %v1055_v24 = vrot.slane %v1671_v60, %v2056_v16 }
  0xa9   : > { %v851_v31 = vmul.f32 %v2199_v17, %v832_v26  ;;  %v852_v32 = vmul.f32 %v2202_v18, %v835_v28  ;;  %v2258_v26 = vrot.slane %v1670_v61, %v2051_v14  ;;  %v2261_v28 = vrot.slane %v1670_v61, %v2056_v16 }
  0xaa   : > { %1704 = vmatpush1.bf16.msra.mxu0 %v1703_v3 }
  0xab   : > { %v371_v36 = vpop.permute.xlu1 %370  ;;  %v369_v37 = vpop.permute.xlu0 %368  ;;  %v1705_v38 = vpack.c.bf16 %v852_v32, %v871_v30  ;;  %v1707_v45 = vpack.c.bf16 %v851_v31, %v870_v29 }
  0xac   : > { %v2236_v50 = vsel %vm372_vm6, %v369_v37, %v371_v36  ;;  %v2240_v51 = vsel %vm372_vm6, %v371_v36, %v369_v37 }
  0xad   : > { %1706 = vmatprep.subr.bf16.mxu0 %v1705_v38  ;;  %v964_v56 = vmul.f32 %v957_v46, %v2236_v50  ;;  %v965_v57 = vmul.f32 %v961_v47, %v2240_v51  ;;  %v1675_v46 = vld [vmem:[%s2043_s26 + $0x10] ss:$8 sm:$0x3] }
  0xae   : > { %1708 = vmatpush1.bf16.msra.mxu0 %v1707_v45  ;;  %v1674_v47 = vld [vmem:[%s2519_s3 + $0x10] ss:$8 sm:$0x3] }
  0xaf   : > { %v921_v52 = vpop.permute.xlu1 %920  ;;  %v915_v53 = vpop.permute.xlu0 %914 }
  0xb0   : > { %v926_v54 = vsel %vm372_vm6, %v915_v53, %v921_v52  ;;  %v929_v55 = vsel %vm372_vm6, %v921_v52, %v915_v53 }
  0xb1   : > { %v945_v58 = vmul.f32 %v2229_v48, %v926_v54  ;;  %v946_v59 = vmul.f32 %v2232_v49, %v929_v55 }
  0xb3   : > { %v378_v62 = vpop.permute.xlu1 %377  ;;  %v376_v12 = vpop.permute.xlu0 %375  ;;  %v1709_v15 = vpack.c.bf16 %v946_v59, %v965_v57  ;;  %v1711_v3 = vpack.c.bf16 %v945_v58, %v964_v56  ;;  %v1145_v56 = vrot.slane %v1675_v46, %v2051_v14  ;;  %v1149_v57 = vrot.slane %v1675_v46, %v2056_v16 }
  0xb4   : > { %v2265_v29 = vsel %vm379_vm7, %v376_v12, %v378_v62  ;;  %v2269_v30 = vsel %vm379_vm7, %v378_v62, %v376_v12  ;;  %v2287_v58 = vrot.slane %v1674_v47, %v2051_v14  ;;  %v2290_v59 = vrot.slane %v1674_v47, %v2056_v16  ;;  %v1646_v62 = vld [vmem:[%s2043_s26 + $0x22] ss:$8 sm:$0x3] }
  0xb5   : > { %1710 = vmatprep.subr.bf16.mxu0 %v1709_v15  ;;  %v1058_v36 = vmul.f32 %v1051_v22, %v2265_v29  ;;  %v1059_v37 = vmul.f32 %v1055_v24, %v2269_v30  ;;  %v1645_v24 = vld [vmem:[%s2043_s26 + $0x11] ss:$8 sm:$0x3] }
  0xb6   : > { %1712 = vmatpush1.bf16.msra.mxu0 %v1711_v3 }
  0xb7   : > { %v1015_v31 = vpop.permute.xlu1 %1014  ;;  %v1009_v32 = vpop.permute.xlu0 %1008 }
  0xb8   : > { %v1020_v35 = vsel %vm379_vm7, %v1009_v32, %v1015_v31  ;;  %v1023_v2 = vsel %vm379_vm7, %v1015_v31, %v1009_v32 }
  0xb9   : > { %v1039_v38 = vmul.f32 %v2258_v26, %v1020_v35  ;;  %v1040_v45 = vmul.f32 %v2261_v28, %v1023_v2 }
  0xbb   : > { %v385_v52 = vpop.permute.xlu1 %384  ;;  %v383_v53 = vpop.permute.xlu0 %382  ;;  %v1713_v54 = vpack.c.bf16 %v1040_v45, %v1059_v37  ;;  %v1715_v55 = vpack.c.bf16 %v1039_v38, %v1058_v36  ;;  %v468_v36 = vrot.slane %v1646_v62, %v2051_v14  ;;  %v472_v37 = vrot.slane %v1646_v62, %v2056_v16  ;;  %v1650_v62 = vld [vmem:[%s2043_s26 + $0x23] ss:$8 sm:$0x3] }
  0xbc   : > { %v2294_v60 = vsel %vm386_vm8, %v383_v53, %v385_v52  ;;  %v2298_v61 = vsel %vm386_vm8, %v385_v52, %v383_v53  ;;  %v453_v52 = vrot.slane %v1645_v24, %v2056_v16  ;;  %v449_v53 = vrot.slane %v1645_v24, %v2051_v14 }
  0xbd   : > { %1714 = vmatprep.subr.bf16.mxu0 %v1713_v54  ;;  %v1152_v31 = vmul.f32 %v1145_v56, %v2294_v60  ;;  %v1153_v32 = vmul.f32 %v1149_v57, %v2298_v61  ;;  %v2317_v54 = vld [vmem:[%s2520_s4] sm:$0xff]  ;;  %v476_v56 = vmul.f32 %v472_v37, %v2082_v27  ;;  %v1649_v57 = vld [vmem:[%s2043_s26 + $0x12] ss:$8 sm:$0x3] }
  0xbe   : > { %1716 = vmatpush1.bf16.msra.mxu0 %v1715_v55  ;;  %v475_v55 = vmul.f32 %v468_v36, %v2073_v23  ;;  %v543_v37 = vrot.slane %v1649_v57, %v2051_v14 }
  0xbf   : > { %v1109_v12 = vpop.permute.xlu1 %1108  ;;  %v1103_v15 = vpop.permute.xlu0 %1102 }
  0xc0   : > { %v1114_v3 = vsel %vm386_vm8, %v1103_v15, %v1109_v12  ;;  %v1117_v22 = vsel %vm386_vm8, %v1109_v12, %v1103_v15 }
  0xc1   : > { %v1133_v35 = vmul.f32 %v2287_v58, %v1114_v3  ;;  %v1134_v2 = vmul.f32 %v2290_v59, %v1117_v22  ;;  %v457_v3 = vmul.f32 %v453_v52, %v2082_v27  ;;  %v456_v22 = vmul.f32 %v449_v53, %v2073_v23 }
  0xc3   : > { %v394_v38 = vpop.permute.xlu1 %393  ;;  %v392_v45 = vpop.permute.xlu0 %391  ;;  %v1717_v46 = vpack.c.bf16 %v1134_v2, %v1153_v32  ;;  %v1719_v47 = vpack.c.bf16 %v1133_v35, %v1152_v31 }
  0xc5   : > { %1718 = vmatprep.subr.bf16.mxu0 %v1717_v46  ;;  %v562_v46 = vrot.slane %v1650_v62, %v2051_v14 }
  0xc6   : > { %1720 = vmatpush1.bf16.msra.mxu0 %v1719_v47  ;;  %v566_v47 = vrot.slane %v1650_v62, %v2056_v16 }
  0xc7   : > { %v400_v12 = vpop.permute.xlu1 %399  ;;  %v398_v15 = vpop.permute.xlu0 %397  ;;  %v569_v62 = vmul.f32 %v562_v46, %v2107_v40  ;;  %v1657_v46 = vld [vmem:[%s2043_s26 + $0x14] ss:$8 sm:$0x3] }
  0xc8   : > { %v403_v24 = vsel %vm337_vm1, %v394_v38, %v400_v12  ;;  %v406_v31 = vsel %vm337_vm1, %v400_v12, %v394_v38  ;;  %v402_v32 = vsel %vm337_vm1, %v392_v45, %v398_v15  ;;  %v405_v35 = vsel %vm337_vm1, %v398_v15, %v392_v45 }
  0xc9   : > { %v423_v2 = vmul.f32 %v2065_v20, %v406_v31  ;;  %v424_v36 = vmul.f32 %v2077_v25, %v403_v24  ;;  %v421_v27 = vmul.f32 %v2065_v20, %v405_v35  ;;  %v422_v23 = vmul.f32 %v2077_v25, %v402_v32  ;;  %1373 = vmatmul.mubr.f32.vlgmr.msra.gmra.mrb[0].mxu0 %v2317_v54 }
  0xca   : > { %v547_v38 = vrot.slane %v1649_v57, %v2056_v16  ;;  %1680 = vmatprep.mubr.msk.f32.mxu0 %vm1304_vm0, %v1965_v4  ;;  %v550_v57 = vmul.f32 %v543_v37, %v2107_v40  ;;  %v570_v24 = vmul.f32 %v566_v47, %v2103_v39  ;;  %v1653_v4 = vld [vmem:[%s2043_s26 + $0x13] ss:$8 sm:$0x3] }
  0xcb   : > { %v1759_v45 = vpack.c.bf16 %v423_v2, %v475_v55  ;;  %v486_v52 = vpop.permute.xlu1 %485  ;;  %v484_v20 = vpop.permute.xlu0 %483  ;;  %v1721_v53 = vpack.c.bf16 %v422_v23, %v457_v3  ;;  %v1757_v25 = vpack.c.bf16 %v424_v36, %v476_v56  ;;  %v1723_v12 = vpack.c.bf16 %v421_v27, %v456_v22  ;;  %v1654_v55 = vld [vmem:[%s2043_s26 + $0x24] ss:$8 sm:$0x3] }
  0xcc   : > { %v551_v15 = vmul.f32 %v547_v38, %v2103_v39  ;;  %v637_v27 = vrot.slane %v1653_v4, %v2051_v14  ;;  %v641_v23 = vrot.slane %v1653_v4, %v2056_v16  ;;  %v656_v37 = vrot.slane %v1654_v55, %v2051_v14 }
  0xcd   : > { %1722 = vmatprep.subr.bf16.mxu1 %v1721_v53  ;;  %1758 = vmatprep.subr.bf16.mxu0 %v1757_v25  ;;  %v660_v38 = vrot.slane %v1654_v55, %v2056_v16  ;;  %v735_v25 = vrot.slane %v1657_v46, %v2056_v16 }
  0xce   : > { %1724 = vmatpush1.bf16.msra.mxu1 %v1723_v12  ;;  %1760 = vmatpush1.bf16.msra.mxu0 %v1759_v45  ;;  %v1658_v12 = vld [vmem:[%s2043_s26 + $0x25] ss:$8 sm:$0x3]  ;;  %v644_v4 = vmul.f32 %v637_v27, %v2146_v11 }
  0xcf   : > { %v492_v31 = vpop.permute.xlu1 %491  ;;  %v490_v32 = vpop.permute.xlu0 %489  ;;  %v754_v27 = vrot.slane %v1658_v12, %v2056_v16 }
  0xd0   : > { %v495_v56 = vsel %vm344_vm2, %v486_v52, %v492_v31  ;;  %v498_v3 = vsel %vm344_vm2, %v492_v31, %v486_v52  ;;  %v494_v22 = vsel %vm344_vm2, %v484_v20, %v490_v32  ;;  %v497_v35 = vsel %vm344_vm2, %v490_v32, %v484_v20  ;;  %v1660_v31 = vld [vmem:[%s2043_s26 + $0x15] ss:$8 sm:$0x3]  ;;  %v1661_v32 = vld [vmem:[%s2043_s26 + $0x26] ss:$8 sm:$0x3] }
  0xd1   : > { %v516_v40 = vmul.f32 %v2090_v33, %v498_v3  ;;  %v517_v39 = vmul.f32 %v2093_v34, %v495_v56  ;;  %v514_v2 = vmul.f32 %v2090_v33, %v497_v35  ;;  %v515_v36 = vmul.f32 %v2093_v34, %v494_v22 }
  0xd2   : > { %v731_v34 = vrot.slane %v1657_v46, %v2051_v14 }
  0xd3   : > { %v1763_v47 = vpack.c.bf16 %v516_v40, %v569_v62  ;;  %v580_v45 = vpop.permute.xlu1 %579  ;;  %v578_v52 = vpop.permute.xlu0 %577  ;;  %v1725_v20 = vpack.c.bf16 %v515_v36, %v551_v15  ;;  %v1761_v53 = vpack.c.bf16 %v517_v39, %v570_v24  ;;  %v1727_v33 = vpack.c.bf16 %v514_v2, %v550_v57 }
  0xd4   : > { %v645_v62 = vmul.f32 %v641_v23, %v2142_v10  ;;  %v663_v15 = vmul.f32 %v656_v37, %v2146_v11  ;;  %v664_v24 = vmul.f32 %v660_v38, %v2142_v10  ;;  %v1664_v11 = vld [vmem:[%s2043_s26 + $0x16] ss:$8 sm:$0x3]  ;;  %v750_v36 = vrot.slane %v1658_v12, %v2051_v14  ;;  %v1665_v23 = vld [vmem:[%s2043_s26 + $0x27] ss:$8 sm:$0x3] }
  0xd5   : > { %1726 = vmatprep.subr.bf16.mxu1 %v1725_v20  ;;  %1762 = vmatprep.subr.bf16.mxu0 %v1761_v53  ;;  %v792_v37 = vrot.slane %v1660_v31, %v2056_v16  ;;  %v811_v38 = vrot.slane %v1661_v32, %v2056_v16  ;;  %v807_v12 = vrot.slane %v1661_v32, %v2051_v14 }
  0xd6   : > { %1728 = vmatpush1.bf16.msra.mxu1 %v1727_v33  ;;  %1764 = vmatpush1.bf16.msra.mxu0 %v1763_v47  ;;  %v882_v33 = vrot.slane %v1664_v11, %v2051_v14 }
  0xd7   : > { %v586_v57 = vpop.permute.xlu1 %585  ;;  %v584_v55 = vpop.permute.xlu0 %583 }
  0xd8   : > { %v589_v56 = vsel %vm351_vm3, %v580_v45, %v586_v57  ;;  %v592_v3 = vsel %vm351_vm3, %v586_v57, %v580_v45  ;;  %v588_v22 = vsel %vm351_vm3, %v578_v52, %v584_v55  ;;  %v591_v35 = vsel %vm351_vm3, %v584_v55, %v578_v52 }
  0xd9   : > { %v610_v10 = vmul.f32 %v2135_v63, %v592_v3  ;;  %v611_v40 = vmul.f32 %v2138_v9, %v589_v56  ;;  %v608_v39 = vmul.f32 %v2135_v63, %v591_v35  ;;  %v609_v2 = vmul.f32 %v2138_v9, %v588_v22 }
  0xda   : > { %v886_v63 = vrot.slane %v1664_v11, %v2056_v16  ;;  %v901_v9 = vrot.slane %v1665_v23, %v2051_v14  ;;  %v905_v57 = vrot.slane %v1665_v23, %v2056_v16  ;;  %v739_v55 = vmul.f32 %v735_v25, %v2173_v43 }
  0xdb   : > { %v1767_v46 = vpack.c.bf16 %v610_v10, %v663_v15  ;;  %v674_v47 = vpop.permute.xlu1 %673  ;;  %v672_v45 = vpop.permute.xlu0 %671  ;;  %v1729_v52 = vpack.c.bf16 %v609_v2, %v645_v62  ;;  %v1765_v20 = vpack.c.bf16 %v611_v40, %v664_v24  ;;  %v1731_v53 = vpack.c.bf16 %v608_v39, %v644_v4  ;;  %v1668_v10 = vld [vmem:[%s2043_s26 + $0x17] ss:$8 sm:$0x3] }
  0xdc   : > { %v796_v15 = vmul.f32 %v792_v37, %v1884_v0  ;;  %v815_v62 = vmul.f32 %v811_v38, %v1884_v0  ;;  %v788_v4 = vrot.slane %v1660_v31, %v2051_v14  ;;  %v738_v24 = vmul.f32 %v731_v34, %v2177_v44 }
  0xdd   : > { %1730 = vmatprep.subr.bf16.mxu1 %v1729_v52  ;;  %1766 = vmatprep.subr.bf16.mxu0 %v1765_v20  ;;  %v757_v56 = vmul.f32 %v750_v36, %v2177_v44  ;;  %v758_v3 = vmul.f32 %v754_v27, %v2173_v43  ;;  %v814_v36 = vmul.f32 %v807_v12, %v1886_v1  ;;  %v1669_v20 = vld [vmem:[%s2043_s26 + $0x30] ss:$8 sm:$0x3] }
  0xde   : > { %1732 = vmatpush1.bf16.msra.mxu1 %v1731_v53  ;;  %1768 = vmatpush1.bf16.msra.mxu0 %v1767_v46  ;;  %v1737_v40 = vpack.c.bf16 %v1989_v8, %v796_v15  ;;  %v1773_v39 = vpack.c.bf16 %v1986_v7, %v815_v62  ;;  %v795_v2 = vmul.f32 %v788_v4, %v1886_v1 }
  0xdf   : > { %v680_v22 = vpop.permute.xlu1 %679  ;;  %v678_v35 = vpop.permute.xlu0 %677  ;;  %v1775_v8 = vpack.c.bf16 %v1976_v5, %v814_v36  ;;  %v890_v1 = vmul.f32 %v886_v63, %v2210_v21  ;;  %v909_v52 = vmul.f32 %v905_v57, %v2210_v21  ;;  %v980_v57 = vrot.slane %v1668_v10, %v2056_v16 }
  0xe0   : > { %v683_v32 = vsel %vm358_vm4, %v674_v47, %v680_v22  ;;  %v686_v11 = vsel %vm358_vm4, %v680_v22, %v674_v47  ;;  %v682_v0 = vsel %vm358_vm4, %v672_v45, %v678_v35  ;;  %v685_v34 = vsel %vm358_vm4, %v678_v35, %v672_v45 }
  0xe1   : > { %v704_v25 = vmul.f32 %v2166_v41, %v686_v11  ;;  %v705_v44 = vmul.f32 %v2169_v42, %v683_v32  ;;  %v702_v43 = vmul.f32 %v2166_v41, %v685_v34  ;;  %v703_v31 = vmul.f32 %v2169_v42, %v682_v0  ;;  %v1672_v0 = vld [vmem:[%s2043_s26 + $0x20] ss:$8 sm:$0x3]  ;;  %v1673_v34 = vld [vmem:[%s2043_s26 + $0x31] ss:$8 sm:$0x3] }
  0xe2   : > { %v976_v41 = vrot.slane %v1668_v10, %v2051_v14  ;;  %v889_v42 = vmul.f32 %v882_v33, %v2206_v19  ;;  %v1739_v7 = vpack.c.bf16 %v1979_v6, %v795_v2  ;;  %v908_v45 = vmul.f32 %v901_v9, %v2206_v19 }
  0xe3   : > { %v1771_v27 = vpack.c.bf16 %v704_v25, %v757_v56  ;;  %v825_v23 = vpop.permute.xlu1 %824  ;;  %v823_v37 = vpop.permute.xlu0 %822  ;;  %v1733_v38 = vpack.c.bf16 %v703_v31, %v739_v55  ;;  %v1769_v46 = vpack.c.bf16 %v705_v44, %v758_v3  ;;  %v1735_v47 = vpack.c.bf16 %v702_v43, %v738_v24 }
  0xe4   : > { %v995_v62 = vrot.slane %v1669_v20, %v2051_v14  ;;  %v999_v4 = vrot.slane %v1669_v20, %v2056_v16  ;;  %v1070_v36 = vrot.slane %v1672_v0, %v2051_v14 }
  0xe5   : > { %1734 = vmatprep.subr.bf16.mxu1 %v1733_v38  ;;  %1770 = vmatprep.subr.bf16.mxu0 %v1769_v46 }
  0xe6   : > { %1736 = vmatpush1.bf16.msra.mxu1 %v1735_v47  ;;  %1772 = vmatpush1.bf16.msra.mxu0 %v1771_v27  ;;  %v1002_v32 = vmul.f32 %v995_v62, %v2236_v50  ;;  %v1003_v11 = vmul.f32 %v999_v4, %v2240_v51  ;;  %v1074_v27 = vrot.slane %v1672_v0, %v2056_v16 }
  0xe7   : > { %v831_v53 = vpop.permute.xlu1 %830  ;;  %v829_v12 = vpop.permute.xlu0 %828  ;;  %1738 = vmatprep.subr.bf16.mxu1 %v1737_v40  ;;  %1774 = vmatprep.subr.bf16.mxu0 %v1773_v39 }
  0xe8   : > { %v834_v33 = vsel %vm365_vm5, %v825_v23, %v831_v53  ;;  %v837_v15 = vsel %vm365_vm5, %v831_v53, %v825_v23  ;;  %v833_v5 = vsel %vm365_vm5, %v823_v37, %v829_v12  ;;  %v836_v6 = vsel %vm365_vm5, %v829_v12, %v823_v37 }
  0xe9   : > { %v855_v19 = vmul.f32 %v2199_v17, %v834_v33  ;;  %v856_v21 = vmul.f32 %v2202_v18, %v837_v15  ;;  %v853_v63 = vmul.f32 %v2199_v17, %v833_v5  ;;  %v854_v9 = vmul.f32 %v2202_v18, %v836_v6  ;;  %v1677_v15 = vld [vmem:[%s2043_s26 + $0x32] ss:$8 sm:$0x3] }
  0xea   : > { %1740 = vmatpush1.bf16.msra.mxu1 %v1739_v7  ;;  %1776 = vmatpush1.bf16.msra.mxu0 %v1775_v8  ;;  %v983_v17 = vmul.f32 %v976_v41, %v2236_v50  ;;  %v984_v18 = vmul.f32 %v980_v57, %v2240_v51  ;;  %v1089_v23 = vrot.slane %v1673_v34, %v2051_v14 }
  0xeb   : > { %v1779_v24 = vpack.c.bf16 %v855_v19, %v908_v45  ;;  %v919_v55 = vpop.permute.xlu1 %918  ;;  %v917_v56 = vpop.permute.xlu0 %916  ;;  %v1741_v3 = vpack.c.bf16 %v854_v9, %v890_v1  ;;  %v1777_v22 = vpack.c.bf16 %v856_v21, %v909_v52  ;;  %v1743_v35 = vpack.c.bf16 %v853_v63, %v889_v42  ;;  %v1676_v19 = vld [vmem:[%s2043_s26 + $0x21] ss:$8 sm:$0x3] }
  0xec   : > { %v1093_v37 = vrot.slane %v1673_v34, %v2056_v16  ;;  %v1096_v8 = vmul.f32 %v1089_v23, %v2265_v29 }
  0xed   : > { %1742 = vmatprep.subr.bf16.mxu1 %v1741_v3  ;;  %1778 = vmatprep.subr.bf16.mxu0 %v1777_v22  ;;  %v1168_v3 = vrot.slane %v1676_v19, %v2056_v16 }
  0xee   : > { %1744 = vmatpush1.bf16.msra.mxu1 %v1743_v35  ;;  %1780 = vmatpush1.bf16.msra.mxu0 %v1779_v24  ;;  %v1097_v1 = vmul.f32 %v1093_v37, %v2269_v30  ;;  %v1183_v24 = vrot.slane %v1677_v15, %v2051_v14 }
  0xef   : > { %v925_v25 = vpop.permute.xlu1 %924  ;;  %v923_v44 = vpop.permute.xlu0 %922  ;;  %v1172_v34 = vmul.f32 %v1168_v3, %v2298_v61 }
  0xf0   : > { %v928_v43 = vsel %vm372_vm6, %v919_v55, %v925_v25  ;;  %v931_v31 = vsel %vm372_vm6, %v925_v25, %v919_v55  ;;  %v927_v10 = vsel %vm372_vm6, %v917_v56, %v923_v44  ;;  %v930_v40 = vsel %vm372_vm6, %v923_v44, %v917_v56 }
  0xf1   : > { %v949_v50 = vmul.f32 %v2229_v48, %v928_v43  ;;  %v950_v51 = vmul.f32 %v2232_v49, %v931_v31  ;;  %v947_v39 = vmul.f32 %v2229_v48, %v927_v10  ;;  %v948_v2 = vmul.f32 %v2232_v49, %v930_v40 }
  0xf2   : > { %v1077_v48 = vmul.f32 %v1070_v36, %v2265_v29  ;;  %v1078_v49 = vmul.f32 %v1074_v27, %v2269_v30  ;;  %v1187_v55 = vrot.slane %v1677_v15, %v2056_v16  ;;  %v1164_v56 = vrot.slane %v1676_v19, %v2051_v14 }
  0xf3   : > { %v1783_v38 = vpack.c.bf16 %v949_v50, %v1002_v32  ;;  %v1013_v46 = vpop.permute.xlu1 %1012  ;;  %v1011_v47 = vpop.permute.xlu0 %1010  ;;  %v1745_v41 = vpack.c.bf16 %v948_v2, %v984_v18  ;;  %v1781_v42 = vpack.c.bf16 %v950_v51, %v1003_v11  ;;  %v1747_v7 = vpack.c.bf16 %v947_v39, %v983_v17 }
  0xf4   : > { %v1191_v22 = vmul.f32 %v1187_v55, %v2298_v61  ;;  %v1171_v0 = vmul.f32 %v1164_v56, %v2294_v60 }
  0xf5   : > { %1746 = vmatprep.subr.bf16.mxu1 %v1745_v41  ;;  %1782 = vmatprep.subr.bf16.mxu0 %v1781_v42 }
  0xf6   : > { %1748 = vmatpush1.bf16.msra.mxu1 %v1747_v7  ;;  %1784 = vmatpush1.bf16.msra.mxu0 %v1783_v38 }
  0xf7   : > { %v1019_v45 = vpop.permute.xlu1 %1018  ;;  %v1017_v52 = vpop.permute.xlu0 %1016 }
  0xf8   : > { %v1022_v20 = vsel %vm379_vm7, %v1013_v46, %v1019_v45  ;;  %v1025_v53 = vsel %vm379_vm7, %v1019_v45, %v1013_v46  ;;  %v1021_v12 = vsel %vm379_vm7, %v1011_v47, %v1017_v52  ;;  %v1024_v33 = vsel %vm379_vm7, %v1017_v52, %v1011_v47 }
  0xf9   : > { %v1043_v5 = vmul.f32 %v2258_v26, %v1022_v20  ;;  %v1044_v29 = vmul.f32 %v2261_v28, %v1025_v53  ;;  %v1041_v30 = vmul.f32 %v2258_v26, %v1021_v12  ;;  %v1042_v6 = vmul.f32 %v2261_v28, %v1024_v33 }
  0xfa   : > { %v1190_v28 = vmul.f32 %v1183_v24, %v2294_v60 }
  0xfb   : > { %v1787_v21 = vpack.c.bf16 %v1043_v5, %v1096_v8  ;;  %v1107_v63 = vpop.permute.xlu1 %1106  ;;  %v1105_v9 = vpop.permute.xlu0 %1104  ;;  %v1749_v57 = vpack.c.bf16 %v1042_v6, %v1078_v49  ;;  %v1785_v62 = vpack.c.bf16 %v1044_v29, %v1097_v1  ;;  %v1751_v4 = vpack.c.bf16 %v1041_v30, %v1077_v48 }
  0xfd   : > { %1750 = vmatprep.subr.bf16.mxu1 %v1749_v57  ;;  %1786 = vmatprep.subr.bf16.mxu0 %v1785_v62 }
  0xfe   : > { %1752 = vmatpush1.bf16.msra.mxu1 %v1751_v4  ;;  %1788 = vmatpush1.bf16.msra.mxu0 %v1787_v21 }
  0xff   : > { %v1113_v26 = vpop.permute.xlu1 %1112  ;;  %v1111_v18 = vpop.permute.xlu0 %1110 }
 0x100   : > { %v1116_v35 = vsel %vm386_vm8, %v1107_v63, %v1113_v26  ;;  %v1119_v17 = vsel %vm386_vm8, %v1113_v26, %v1107_v63  ;;  %v1115_v16 = vsel %vm386_vm8, %v1105_v9, %v1111_v18  ;;  %v1118_v11 = vsel %vm386_vm8, %v1111_v18, %v1105_v9 }
 0x101   : > { %v1137_v32 = vmul.f32 %v2287_v58, %v1116_v35  ;;  %v1138_v14 = vmul.f32 %v2290_v59, %v1119_v17  ;;  %v1135_v25 = vmul.f32 %v2287_v58, %v1115_v16  ;;  %v1136_v44 = vmul.f32 %v2290_v59, %v1118_v11 }
 0x103   : > { %v1791_v43 = vpack.c.bf16 %v1137_v32, %v1190_v28  ;;  %v1789_v31 = vpack.c.bf16 %v1138_v14, %v1191_v22  ;;  %v1753_v10 = vpack.c.bf16 %v1136_v44, %v1172_v34  ;;  %v1755_v40 = vpack.c.bf16 %v1135_v25, %v1171_v0 }
 0x105   : > { %1790 = vmatprep.subr.bf16.mxu0 %v1789_v31  ;;  %1754 = vmatprep.subr.bf16.mxu1 %v1753_v10 }
 0x106   : > { %1792 = vmatpush1.bf16.msra.mxu0 %v1791_v43  ;;  %1756 = vmatpush1.bf16.msra.mxu1 %v1755_v40 }
 0x109   : > { %1515 = vmatmul.mubr.f32.vlgmr.msra.gmra.mrb[2].mxu0 %v2317_v54  ;;  %1444 = vmatmul.mubr.f32.vlgmr.msra.gmra.mrb[0].mxu1 %v2317_v54 }
 0x110   : > { %v1535_v61 = vpop.permute.xlu1 %1534 }
 0x111   : > { %v1524_v13 = vpop.permute.xlu0 %1523 }
 0x19c   : > { %v1374_v60 = vpop.f32.mrb[0].mxu0 }
 0x19d   : > { %v1526_v50 = vmul.f32 %v1524_v13, %v1374_v60  ;;  %v1376_v58 = vpop.f32.mrb[1].mxu0 }
 0x19e   : > { %v1527_v51 = vmul.f32 %v1524_v13, %v1376_v58 }
 0x19f   : > { %v1537_v59 = vadd.f32 %v1535_v61, %v1526_v50 }
 0x1a0   : > { %v1538_v39 = vadd.f32 %v1535_v61, %v1527_v51 }
 0x1a1   : > { %v1543_v2 = vmax.f32 %v1537_v59, 0.0 }
 0x1a2   : > { %v1544_v36 = vmax.f32 %v1538_v39, 0.0 }
 0x1a3   : > { %1549 = vst [vmem:[%s318_s9] sm:$0xff] %v1543_v2 }
 0x1a4   : > { %1550 = vst [vmem:[%s318_s9 + $0x8] sm:$0xff] %v1544_v36 }
 0x1dc   : > { %v1516_v27 = vpop.f32.mrb[2].mxu0  ;;  %v1445_v23 = vpop.f32.mrb[0].mxu1 }
 0x1dd   : > { %v1530_v54 = vmul.f32 %v1524_v13, %v1516_v27  ;;  %v1518_v37 = vpop.f32.mrb[3].mxu0  ;;  %v1528_v38 = vmul.f32 %v1524_v13, %v1445_v23  ;;  %v1447_v46 = vpop.f32.mrb[1].mxu1 }
 0x1de   : > { %v1531_v47 = vmul.f32 %v1524_v13, %v1518_v37  ;;  %v1529_v42 = vmul.f32 %v1524_v13, %v1447_v46 }
 0x1df   : > { %v1541_v41 = vadd.f32 %v1535_v61, %v1530_v54  ;;  %v1539_v7 = vadd.f32 %v1535_v61, %v1528_v38 }
 0x1e0   : > { %v1542_v48 = vadd.f32 %v1535_v61, %v1531_v47  ;;  %v1540_v8 = vadd.f32 %v1535_v61, %v1529_v42 }
 0x1e1   : > { %v1547_v49 = vmax.f32 %v1541_v41, 0.0  ;;  %v1545_v1 = vmax.f32 %v1539_v7, 0.0 }
 0x1e2   : > { %v1548_v45 = vmax.f32 %v1542_v48, 0.0  ;;  %v1546_v52 = vmax.f32 %v1540_v8, 0.0 }
 0x1e3   : > { %1553 = vst [vmem:[%s318_s9 + $0x20] sm:$0xff] %v1547_v49  ;;  %1551 = vst [vmem:[%s318_s9 + $0x10] sm:$0xff] %v1545_v1 }
 0x1e4   : > { %1554 = vst [vmem:[%s318_s9 + $0x28] sm:$0xff] %v1548_v45  ;;  %1552 = vst [vmem:[%s318_s9 + $0x18] sm:$0xff] %v1546_v52 }
 0x1e5 PF: > { %s17_s24 = sadd.s32 1, %s1819_s24  }
 0x1e6   : > { %p14_p4 = scmp.ge.s32.totalorder %s17_s24, 4  }
 0x1e8   :  { %16 = sbr.rel (!%p14_p4) target bundleno = 1 (0x1), region = 117 }

</bundles_post_ra>
